<compile_context>
chip_gen: v7x
topology: tpu7x:2x2x1
jax: 0.10.0
libtpu: 0.0.40
codegen_flags: <defaults>
</compile_context>

<pallas_src>
import functools
import numpy as np
import jax
import jax.numpy as jnp
from jax import lax
from jax.experimental import pallas as pl
from jax.experimental.pallas import tpu as pltpu

# --- ResBlock(L=32, W=11, AR=4, pad=True) configuration -----------------------
L = 32                          # channels
KW = 11                         # conv kernel width (W in the PyTorch code)
AR = 4                          # dilation
PAD = (AR * (KW - 1)) // 2      # 'same' padding == 20
EPS = 1e-5

# Matmul operand dtype.  Set to jnp.bfloat16 on v6e/v7x for ~2x MXU throughput
# and half the im2col store/VMEM traffic (BN/ReLU math stays f32 either way --
# v5e has no bf16 VALU).  Kept at f32 here so the self-test passes tightly.
DOT_DTYPE = jnp.float32


# ------------------------------ Pallas kernel ---------------------------------
def _bn_relu_conv_kernel(*refs, num_tiles, t_tile, seq_len,
                         with_bias, with_residual):
    """Fused pass: conv_dilated(relu(scale*x + shift)) [+ bias] [+ residual].

    grid = (N, num_tiles).  Refs (in order):
      scale (C,1), shift (C,1), [bias (C,1)], w (C, KW*C), x row (C, T),
      [residual tile (C, t_tile)], out tile (C, t_tile),
      act scratch (num_tiles, C, t_tile + 2*PAD), patch scratch (KW*C, t_tile).
    """
    it = iter(refs)
    scale_ref = next(it)
    shift_ref = next(it)
    bias_ref = next(it) if with_bias else None
    w_ref = next(it)
    x_ref = next(it)
    res_ref = next(it) if with_residual else None
    out_ref = next(it)
    act_ref = next(it)
    patch_ref = next(it)

    C = out_ref.shape[0]
    win_len = t_tile + 2 * PAD
    j = pl.program_id(1)

    # --- once per batch row: folded-BN + ReLU, written as overlapping,
    # --- zero-padded (halo = PAD) time windows into the persistent scratch.
    @pl.when(j == 0)
    def _():
        sc = scale_ref[...]                          # (C, 1)
        sh = shift_ref[...]
        xr = x_ref[...].astype(jnp.float32)          # (C, T)
        for jj in range(num_tiles):                  # static unroll
            lo = jj * t_tile - PAD
            hi = lo + win_len
            slo, shi = max(lo, 0), min(hi, seq_len)
            act = jnp.maximum(xr[:, slo:shi] * sc + sh, 0.0)
            pieces = []
            if slo > lo:
                pieces.append(jnp.zeros((C, slo - lo), jnp.float32))
            pieces.append(act)
            if hi > shi:
                pieces.append(jnp.zeros((C, hi - shi), jnp.float32))
            act_ref[jj] = (pieces[0] if len(pieces) == 1
                           else jnp.concatenate(pieces, axis=1))

    # --- im2col for this tile: write each dilation-shifted tap straight into
    # --- the patch scratch (no concats; contraction depth = KW*C = 352).
    window = act_ref[j]                              # (C, win_len)
    for k in range(KW):
        patch_ref[k * C:(k + 1) * C, :] = (
            window[:, k * AR:k * AR + t_tile].astype(patch_ref.dtype))

    # --- one lane-dense MXU matmul: (C, KW*C) @ (KW*C, t_tile) -> (C, t_tile).
    acc = jnp.dot(w_ref[...], patch_ref[...], preferred_element_type=jnp.float32)
    if with_bias:
        acc = acc + bias_ref[...]
    if with_residual:
        acc = acc + res_ref[...].astype(jnp.float32)
    out_ref[...] = acc.astype(out_ref.dtype)


# ------------------------------ pass wrapper ----------------------------------
def _conv_pass(scale, shift, w_mat, x_in, *, bias=None, residual=None, t_tile):
    N, C, T = x_in.shape
    assert T % t_tile == 0 and t_tile % 128 == 0, \
        "demo requires T to be a multiple of t_tile (t_tile a multiple of 128)"
    num_tiles = T // t_tile
    win_len = t_tile + 2 * PAD

    args = [scale.reshape(C, 1).astype(jnp.float32),
            shift.reshape(C, 1).astype(jnp.float32)]
    in_specs = [pl.BlockSpec((C, 1), lambda n, j: (0, 0)),
                pl.BlockSpec((C, 1), lambda n, j: (0, 0))]
    if bias is not None:
        args.append(bias.reshape(C, 1).astype(jnp.float32))
        in_specs.append(pl.BlockSpec((C, 1), lambda n, j: (0, 0)))
    args.append(w_mat)
    in_specs.append(pl.BlockSpec(w_mat.shape, lambda n, j: (0, 0)))
    args.append(x_in)
    # full row stays VMEM-resident across the inner (time) axis of the grid
    in_specs.append(pl.BlockSpec((None, C, T), lambda n, j: (n, 0, 0)))
    if residual is not None:
        args.append(residual)
        in_specs.append(pl.BlockSpec((None, C, t_tile), lambda n, j: (n, 0, j)))

    kernel = functools.partial(
        _bn_relu_conv_kernel, num_tiles=num_tiles, t_tile=t_tile, seq_len=T,
        with_bias=bias is not None, with_residual=residual is not None)

    return pl.pallas_call(
        kernel,
        out_shape=jax.ShapeDtypeStruct((N, C, T), jnp.float32),
        grid_spec=pltpu.PrefetchScalarGridSpec(
            num_scalar_prefetch=0,
            grid=(N, num_tiles),
            in_specs=in_specs,
            out_specs=pl.BlockSpec((None, C, t_tile), lambda n, j: (n, 0, j)),
            scratch_shapes=[pltpu.VMEM((num_tiles, C, win_len), jnp.float32),
                            pltpu.VMEM((KW * C, t_tile), DOT_DTYPE)]),
        compiler_params=pltpu.CompilerParams(
            dimension_semantics=("parallel", "arbitrary")),
    )(*args)


# ------------------------------ module wrapper ---------------------------------
def _weight_mat(w):
    # PyTorch Conv1d weight (Cout, Cin, K) -> (Cout, K*Cin), tap-major, matching
    # the patch-scratch row ordering (row k*C + c  <->  tap k, input channel c).
    Cout, Cin, K = w.shape
    return jnp.transpose(w, (0, 2, 1)).reshape(Cout, K * Cin).astype(DOT_DTYPE)


def _fold_bn(h, gamma, beta):
    # Training-mode BatchNorm1d (global batch stats, biased var) folded into a
    # per-channel FMA  scale*h + shift.  Tiny XLA reduction; must be global, so
    # it cannot live inside the tiled kernel.
    mean = jnp.mean(h, axis=(0, 2))
    var = jnp.var(h, axis=(0, 2))
    scale = gamma * lax.rsqrt(var + EPS)
    return scale, beta - mean * scale


def resblock_pallas(x_nct, params, *, t_tile=256):
    """x_nct: (N, C, T) float32 in PyTorch's NCT layout. Returns (N, C, T)."""
    N, C, T = x_nct.shape
    assert C == L
    t_tile = min(t_tile, T)
    x = x_nct.astype(jnp.float32)

    # Pass 1: h1 = conv1(relu(bn1(x))), WITHOUT conv1's bias (a per-channel
    # constant before a training-mode BN is exactly cancelled by its mean).
    scale1, shift1 = _fold_bn(x, params['g1'], params['be1'])
    h1 = _conv_pass(scale1, shift1, _weight_mat(params['w1']), x, t_tile=t_tile)

    # Pass 2: out = conv2(relu(bn2(h1))) + b2 + x  (bias + residual fused).
    scale2, shift2 = _fold_bn(h1, params['g2'], params['be2'])
    return _conv_pass(scale2, shift2, _weight_mat(params['w2']), h1,
                      bias=params['b2'], residual=x, t_tile=t_tile)
    # TODO(synk): BatchNorm running-stats (momentum) buffer updates are not
    # modeled; they do not affect the training-mode forward output.


# ------------------------------ pure-JAX reference ------------------------------
def resblock_ref(x, params):
    def bn(h, g, b):
        mean = h.mean(axis=(0, 2), keepdims=True)
        var = ((h - mean) ** 2).mean(axis=(0, 2), keepdims=True)
        return (h - mean) / jnp.sqrt(var + EPS) * g.reshape(1, -1, 1) + b.reshape(1, -1, 1)

    def conv(h, w, b):
        y = lax.conv_general_dilated(h, w, window_strides=(1,),
                                     padding=[(PAD, PAD)], rhs_dilation=(AR,),
                                     dimension_numbers=('NCH', 'OIH', 'NCH'))
        return y + b.reshape(1, -1, 1)

    h = jax.nn.relu(bn(x, params['g1'], params['be1']))
    h = conv(h, params['w1'], params['b1'])
    h = jax.nn.relu(bn(h, params['g2'], params['be2']))
    h = conv(h, params['w2'], params['b2'])
    return h + x


# ------------------------------ main --------------------------------------------
if __name__ == "__main__":
    key = jax.random.PRNGKey(0)
    ks = jax.random.split(key, 9)

    N, T = 2, 512   # small, but wide enough for >=256-lane matmuls and 2 time tiles
    x = jax.random.normal(ks[0], (N, L, T), dtype=jnp.float32)   # PyTorch NCT layout

    params = {
        'w1': 0.1 * jax.random.normal(ks[1], (L, L, KW), dtype=jnp.float32),
        'b1': 0.1 * jax.random.normal(ks[2], (L,), dtype=jnp.float32),
        'g1': 1.0 + 0.1 * jax.random.normal(ks[3], (L,), dtype=jnp.float32),
        'be1': 0.1 * jax.random.normal(ks[4], (L,), dtype=jnp.float32),
        'w2': 0.1 * jax.random.normal(ks[5], (L, L, KW), dtype=jnp.float32),
        'b2': 0.1 * jax.random.normal(ks[6], (L,), dtype=jnp.float32),
        'g2': 1.0 + 0.1 * jax.random.normal(ks[7], (L,), dtype=jnp.float32),
        'be2': 0.1 * jax.random.normal(ks[8], (L,), dtype=jnp.float32),
    }

    out = jax.block_until_ready(resblock_pallas(x, params))
    ref = jax.block_until_ready(resblock_ref(x, params))

    assert out.shape == (N, L, T)
    np.testing.assert_allclose(np.asarray(out), np.asarray(ref), rtol=2e-4, atol=2e-4)
    print("KERNEL_OK")
</pallas_src>

<mosaic_0001>
module attributes {stable_mosaic.version = 11 : i64} {
  func.func @_bn_relu_conv_kernel(%arg0: i32, %arg1: i32, %arg2: memref<32x1xf32, #tpu.memory_space<vmem>>, %arg3: memref<32x1xf32, #tpu.memory_space<vmem>>, %arg4: memref<32x352xf32, #tpu.memory_space<vmem>>, %arg5: memref<1x32x512xf32, #tpu.memory_space<vmem>>, %arg6: memref<1x32x256xf32, #tpu.memory_space<vmem>>, %arg7: memref<2x32x296xf32, #tpu.memory_space<vmem>>, %arg8: memref<352x256xf32, #tpu.memory_space<vmem>>) attributes {dimension_semantics = [#tpu.dimension_semantics<parallel>, #tpu.dimension_semantics<arbitrary>], iteration_bounds = array<i64: 2, 2>, scalar_prefetch = 0 : i64, scratch_operands = 2 : i64, tpu.core_type = #tpu.core_type<tc>, window_params = [{pipeline_mode = #tpu.pipeline_mode<synchronous>, transform_indices = @transform_0, window_bounds = array<i64: 32, 1>}, {pipeline_mode = #tpu.pipeline_mode<synchronous>, transform_indices = @transform_1, window_bounds = array<i64: 32, 1>}, {pipeline_mode = #tpu.pipeline_mode<synchronous>, transform_indices = @transform_2, window_bounds = array<i64: 32, 352>}, {transform_indices = @transform_3, window_bounds = array<i64: 1, 32, 512>}, {transform_indices = @transform_4, window_bounds = array<i64: 1, 32, 256>}]} {
    %c0_i32 = arith.constant 0 : i32
    %0 = arith.cmpi eq, %arg1, %c0_i32 : i32
    %1 = arith.extui %0 : i1 to i32
    %c0_i32_0 = arith.constant 0 : i32
    %2 = arith.cmpi ne, %1, %c0_i32_0 : i32
    scf.if %2 {
      %c0_21 = arith.constant 0 : index
      %c0_22 = arith.constant 0 : index
      %34 = vector.load %arg2[%c0_21, %c0_22] : memref<32x1xf32, #tpu.memory_space<vmem>>, vector<32x1xf32>
      %c0_23 = arith.constant 0 : index
      %c0_24 = arith.constant 0 : index
      %35 = vector.load %arg3[%c0_23, %c0_24] : memref<32x1xf32, #tpu.memory_space<vmem>>, vector<32x1xf32>
      %c0_25 = arith.constant 0 : index
      %c0_26 = arith.constant 0 : index
      %c0_27 = arith.constant 0 : index
      %36 = vector.load %arg5[%c0_25, %c0_26, %c0_27] : memref<1x32x512xf32, #tpu.memory_space<vmem>>, vector<1x32x512xf32>
      %37 = vector.shape_cast %36 : vector<1x32x512xf32> to vector<32x512xf32>
      %38 = vector.extract_strided_slice %37 {offsets = [0, 0], sizes = [32, 276], strides = [1, 1]} : vector<32x512xf32> to vector<32x276xf32>
      %39 = vector.broadcast %34 : vector<32x1xf32> to vector<32x276xf32>
      %40 = arith.mulf %38, %39 : vector<32x276xf32>
      %41 = vector.broadcast %35 : vector<32x1xf32> to vector<32x276xf32>
      %42 = arith.addf %40, %41 : vector<32x276xf32>
      %cst_28 = arith.constant 0.000000e+00 : f32
      %43 = vector.broadcast %cst_28 : f32 to vector<32x276xf32>
      %44 = arith.maximumf %42, %43 : vector<32x276xf32>
      %cst_29 = arith.constant 0.000000e+00 : f32
      %45 = vector.broadcast %cst_29 : f32 to vector<32x20xf32>
      %46 = tpu.concatenate %45, %44 in 1 : vector<32x20xf32>, vector<32x276xf32> -> vector<32x296xf32>
      %c0_30 = arith.constant 0 : index
      %c0_31 = arith.constant 0 : index
      %c0_32 = arith.constant 0 : index
      %47 = vector.load %arg7[%c0_30, %c0_31, %c0_32] : memref<2x32x296xf32, #tpu.memory_space<vmem>>, vector<1x32x296xf32>
      %48 = vector.shape_cast %47 : vector<1x32x296xf32> to vector<32x296xf32>
      %49 = vector.shape_cast %46 : vector<32x296xf32> to vector<1x32x296xf32>
      tpu.vector_store %arg7[%c0_30, %c0_31, %c0_32], %49 {strides = array<i32>} : memref<2x32x296xf32, #tpu.memory_space<vmem>>, vector<1x32x296xf32>,
      %50 = vector.extract_strided_slice %37 {offsets = [0, 236], sizes = [32, 276], strides = [1, 1]} : vector<32x512xf32> to vector<32x276xf32>
      %51 = vector.broadcast %34 : vector<32x1xf32> to vector<32x276xf32>
      %52 = arith.mulf %50, %51 : vector<32x276xf32>
      %53 = vector.broadcast %35 : vector<32x1xf32> to vector<32x276xf32>
      %54 = arith.addf %52, %53 : vector<32x276xf32>
      %cst_33 = arith.constant 0.000000e+00 : f32
      %55 = vector.broadcast %cst_33 : f32 to vector<32x276xf32>
      %56 = arith.maximumf %54, %55 : vector<32x276xf32>
      %cst_34 = arith.constant 0.000000e+00 : f32
      %57 = vector.broadcast %cst_34 : f32 to vector<32x20xf32>
      %58 = tpu.concatenate %56, %57 in 1 : vector<32x276xf32>, vector<32x20xf32> -> vector<32x296xf32>
      %c1 = arith.constant 1 : index
      %c0_35 = arith.constant 0 : index
      %c0_36 = arith.constant 0 : index
      %59 = vector.load %arg7[%c1, %c0_35, %c0_36] : memref<2x32x296xf32, #tpu.memory_space<vmem>>, vector<1x32x296xf32>
      %60 = vector.shape_cast %59 : vector<1x32x296xf32> to vector<32x296xf32>
      %61 = vector.shape_cast %58 : vector<32x296xf32> to vector<1x32x296xf32>
      tpu.vector_store %arg7[%c1, %c0_35, %c0_36], %61 {strides = array<i32>} : memref<2x32x296xf32, #tpu.memory_space<vmem>>, vector<1x32x296xf32>,
    } else {
    }
    %3 = arith.index_cast %arg1 : i32 to index
    %c0 = arith.constant 0 : index
    %c0_1 = arith.constant 0 : index
    %4 = vector.load %arg7[%3, %c0, %c0_1] : memref<2x32x296xf32, #tpu.memory_space<vmem>>, vector<1x32x296xf32>
    %5 = vector.shape_cast %4 : vector<1x32x296xf32> to vector<32x296xf32>
    %6 = vector.extract_strided_slice %5 {offsets = [0, 0], sizes = [32, 256], strides = [1, 1]} : vector<32x296xf32> to vector<32x256xf32>
    %c0_2 = arith.constant 0 : index
    %c0_3 = arith.constant 0 : index
    %7 = vector.load %arg8[%c0_2, %c0_3] : memref<352x256xf32, #tpu.memory_space<vmem>>, vector<32x256xf32>
    tpu.vector_store %arg8[%c0_2, %c0_3], %6 {strides = array<i32>} : memref<352x256xf32, #tpu.memory_space<vmem>>, vector<32x256xf32>,
    %8 = vector.extract_strided_slice %5 {offsets = [0, 4], sizes = [32, 256], strides = [1, 1]} : vector<32x296xf32> to vector<32x256xf32>
    %c32 = arith.constant 32 : index
    %c0_4 = arith.constant 0 : index
    %9 = vector.load %arg8[%c32, %c0_4] : memref<352x256xf32, #tpu.memory_space<vmem>>, vector<32x256xf32>
    tpu.vector_store %arg8[%c32, %c0_4], %8 {strides = array<i32>} : memref<352x256xf32, #tpu.memory_space<vmem>>, vector<32x256xf32>,
    %10 = vector.extract_strided_slice %5 {offsets = [0, 8], sizes = [32, 256], strides = [1, 1]} : vector<32x296xf32> to vector<32x256xf32>
    %c64 = arith.constant 64 : index
    %c0_5 = arith.constant 0 : index
    %11 = vector.load %arg8[%c64, %c0_5] : memref<352x256xf32, #tpu.memory_space<vmem>>, vector<32x256xf32>
    tpu.vector_store %arg8[%c64, %c0_5], %10 {strides = array<i32>} : memref<352x256xf32, #tpu.memory_space<vmem>>, vector<32x256xf32>,
    %12 = vector.extract_strided_slice %5 {offsets = [0, 12], sizes = [32, 256], strides = [1, 1]} : vector<32x296xf32> to vector<32x256xf32>
    %c96 = arith.constant 96 : index
    %c0_6 = arith.constant 0 : index
    %13 = vector.load %arg8[%c96, %c0_6] : memref<352x256xf32, #tpu.memory_space<vmem>>, vector<32x256xf32>
    tpu.vector_store %arg8[%c96, %c0_6], %12 {strides = array<i32>} : memref<352x256xf32, #tpu.memory_space<vmem>>, vector<32x256xf32>,
    %14 = vector.extract_strided_slice %5 {offsets = [0, 16], sizes = [32, 256], strides = [1, 1]} : vector<32x296xf32> to vector<32x256xf32>
    %c128 = arith.constant 128 : index
    %c0_7 = arith.constant 0 : index
    %15 = vector.load %arg8[%c128, %c0_7] : memref<352x256xf32, #tpu.memory_space<vmem>>, vector<32x256xf32>
    tpu.vector_store %arg8[%c128, %c0_7], %14 {strides = array<i32>} : memref<352x256xf32, #tpu.memory_space<vmem>>, vector<32x256xf32>,
    %16 = vector.extract_strided_slice %5 {offsets = [0, 20], sizes = [32, 256], strides = [1, 1]} : vector<32x296xf32> to vector<32x256xf32>
    %c160 = arith.constant 160 : index
    %c0_8 = arith.constant 0 : index
    %17 = vector.load %arg8[%c160, %c0_8] : memref<352x256xf32, #tpu.memory_space<vmem>>, vector<32x256xf32>
    tpu.vector_store %arg8[%c160, %c0_8], %16 {strides = array<i32>} : memref<352x256xf32, #tpu.memory_space<vmem>>, vector<32x256xf32>,
    %18 = vector.extract_strided_slice %5 {offsets = [0, 24], sizes = [32, 256], strides = [1, 1]} : vector<32x296xf32> to vector<32x256xf32>
    %c192 = arith.constant 192 : index
    %c0_9 = arith.constant 0 : index
    %19 = vector.load %arg8[%c192, %c0_9] : memref<352x256xf32, #tpu.memory_space<vmem>>, vector<32x256xf32>
    tpu.vector_store %arg8[%c192, %c0_9], %18 {strides = array<i32>} : memref<352x256xf32, #tpu.memory_space<vmem>>, vector<32x256xf32>,
    %20 = vector.extract_strided_slice %5 {offsets = [0, 28], sizes = [32, 256], strides = [1, 1]} : vector<32x296xf32> to vector<32x256xf32>
    %c224 = arith.constant 224 : index
    %c0_10 = arith.constant 0 : index
    %21 = vector.load %arg8[%c224, %c0_10] : memref<352x256xf32, #tpu.memory_space<vmem>>, vector<32x256xf32>
    tpu.vector_store %arg8[%c224, %c0_10], %20 {strides = array<i32>} : memref<352x256xf32, #tpu.memory_space<vmem>>, vector<32x256xf32>,
    %22 = vector.extract_strided_slice %5 {offsets = [0, 32], sizes = [32, 256], strides = [1, 1]} : vector<32x296xf32> to vector<32x256xf32>
    %c256 = arith.constant 256 : index
    %c0_11 = arith.constant 0 : index
    %23 = vector.load %arg8[%c256, %c0_11] : memref<352x256xf32, #tpu.memory_space<vmem>>, vector<32x256xf32>
    tpu.vector_store %arg8[%c256, %c0_11], %22 {strides = array<i32>} : memref<352x256xf32, #tpu.memory_space<vmem>>, vector<32x256xf32>,
    %24 = vector.extract_strided_slice %5 {offsets = [0, 36], sizes = [32, 256], strides = [1, 1]} : vector<32x296xf32> to vector<32x256xf32>
    %c288 = arith.constant 288 : index
    %c0_12 = arith.constant 0 : index
    %25 = vector.load %arg8[%c288, %c0_12] : memref<352x256xf32, #tpu.memory_space<vmem>>, vector<32x256xf32>
    tpu.vector_store %arg8[%c288, %c0_12], %24 {strides = array<i32>} : memref<352x256xf32, #tpu.memory_space<vmem>>, vector<32x256xf32>,
    %26 = vector.extract_strided_slice %5 {offsets = [0, 40], sizes = [32, 256], strides = [1, 1]} : vector<32x296xf32> to vector<32x256xf32>
    %c320 = arith.constant 320 : index
    %c0_13 = arith.constant 0 : index
    %27 = vector.load %arg8[%c320, %c0_13] : memref<352x256xf32, #tpu.memory_space<vmem>>, vector<32x256xf32>
    tpu.vector_store %arg8[%c320, %c0_13], %26 {strides = array<i32>} : memref<352x256xf32, #tpu.memory_space<vmem>>, vector<32x256xf32>,
    %c0_14 = arith.constant 0 : index
    %c0_15 = arith.constant 0 : index
    %28 = vector.load %arg4[%c0_14, %c0_15] : memref<32x352xf32, #tpu.memory_space<vmem>>, vector<32x352xf32>
    %c0_16 = arith.constant 0 : index
    %c0_17 = arith.constant 0 : index
    %29 = vector.load %arg8[%c0_16, %c0_17] : memref<352x256xf32, #tpu.memory_space<vmem>>, vector<352x256xf32>
    %cst = arith.constant dense<0.000000e+00> : vector<32x256xf32>
    %30 = tpu.matmul %28, %29, %cst {dimension_numbers = #tpu.dot_dimension_numbers<[1], [0], [0], [1], [0, 0, 1, 1], [], []>} : vector<32x352xf32>, vector<352x256xf32>, vector<32x256xf32> -> vector<32x256xf32>
    %c0_18 = arith.constant 0 : index
    %c0_19 = arith.constant 0 : index
    %c0_20 = arith.constant 0 : index
    %31 = vector.load %arg6[%c0_18, %c0_19, %c0_20] : memref<1x32x256xf32, #tpu.memory_space<vmem>>, vector<1x32x256xf32>
    %32 = vector.shape_cast %31 : vector<1x32x256xf32> to vector<32x256xf32>
    %33 = vector.shape_cast %30 : vector<32x256xf32> to vector<1x32x256xf32>
    tpu.vector_store %arg6[%c0_18, %c0_19, %c0_20], %33 {strides = array<i32>} : memref<1x32x256xf32, #tpu.memory_space<vmem>>, vector<1x32x256xf32>,
    return
  }
  func.func @transform_0(%arg0: i32, %arg1: i32) -> (i32, i32) {
    %c0_i32 = arith.constant 0 : i32
    %c0_i32_0 = arith.constant 0 : i32
    %c0_i32_1 = arith.constant 0 : i32
    return %c0_i32, %c0_i32_0 : i32, i32
  }
  func.func @transform_1(%arg0: i32, %arg1: i32) -> (i32, i32) {
    %c0_i32 = arith.constant 0 : i32
    %c0_i32_0 = arith.constant 0 : i32
    %c0_i32_1 = arith.constant 0 : i32
    return %c0_i32, %c0_i32_0 : i32, i32
  }
  func.func @transform_2(%arg0: i32, %arg1: i32) -> (i32, i32) {
    %c0_i32 = arith.constant 0 : i32
    %c0_i32_0 = arith.constant 0 : i32
    %c0_i32_1 = arith.constant 0 : i32
    return %c0_i32, %c0_i32_0 : i32, i32
  }
  func.func @transform_3(%arg0: i32, %arg1: i32) -> (i32, i32, i32) {
    %c0_i32 = arith.constant 0 : i32
    %c0_i32_0 = arith.constant 0 : i32
    %c0_i32_1 = arith.constant 0 : i32
    return %arg0, %c0_i32, %c0_i32_0 : i32, i32, i32
  }
  func.func @transform_4(%arg0: i32, %arg1: i32) -> (i32, i32, i32) {
    %c0_i32 = arith.constant 0 : i32
    %c0_i32_0 = arith.constant 0 : i32
    return %arg0, %c0_i32, %arg1 : i32, i32, i32
  }
}

</mosaic_0001>

<bundles_post_ra>
// kernel: tpu_custom_call.1
= control target key start
LH: loop header
LB: loop body
LE: loop exit
PB: predicated region body
PF: predicated region fallthrough
CT: control target
= control target key end

     0   :  { %s2765_s0 = inlined_call_operand.vmem [shape: f32[32,1], index: 0, kind: input, shape index: {}]   ;;  %s2766_s1 = inlined_call_operand.vmem [shape: f32[32,1], index: 1, kind: input, shape index: {}]   ;;  %s2767_s2 = inlined_call_operand.hbm [shape: f32[32,352], index: 2, kind: input, shape index: {}]   ;;  %s2768_s3 = inlined_call_operand.hbm [shape: f32[2,32,512], index: 3, kind: input, shape index: {}]   ;;  %s2769_s4 = inlined_call_operand.hbm [shape: f32[2,32,512], index: 4, kind: output, shape index: {}]  }
   0x1   :  { %2781 = sst [smem:[#allocation18_spill]] %s2767_s2 }
   0x2   :  { %2782 = sst [smem:[#allocation19_spill]] %s2769_s4 }
   0x3   :  { %9 = vsyncpa [#allocation5], 0 }
   0x4   :  { %10 = vsyncpa [#allocation8], 0 }
   0x5   :  { %12 = vsyncpa [#allocation8 + $0x1], 0 }
   0x6   :  { %13 = vsyncpa [#allocation6], 0 }
   0x7   :  { %15 = vsyncpa [#allocation6 + $0x1], 0  ;;  %s2208_s15 = smov 0   ;;  %s2210_s16 = smov 0  }
   0x8   :  { %s2212_s17 = smov 0   ;;  %s2214_s18 = smov 0  }
   0x9   :  { %s2216_s19 = smov 0   ;;  %s2218_s20 = smov 0  }
   0xa   :  { %s2220_s21 = smov 0   ;;  %s2222_s22 = smov 0  }
   0xb   :  { %s2224_s23 = smov 0   ;;  %s2226_s24 = smov 0  }
   0xc   :  { %s2228_s25 = smov 0  }
   0xd LB: > { %2783 = sst [smem:[#allocation13_spill]] %s2118_s15  ;;  %s1417_s26 = sadd.s32 4294967295, %s2158_s25   ;;  %s2158_s25 = sphi %s2228_s25, %s21_s25   ;;  %s2154_s24 = sphi %s2226_s24, %s2816_s24   ;;  %s2150_s23 = sphi %s2224_s23, %s2807_s23   ;;  %s2146_s22 = sphi %s2222_s22, %s2815_s22   ;;  %s2142_s21 = sphi %s2220_s21, %s2806_s21   ;;  %s2138_s20 = sphi %s2218_s20, %s2814_s20   ;;  %s2134_s19 = sphi %s2216_s19, %s2813_s19   ;;  %s2130_s18 = sphi %s2214_s18, %s2812_s18   ;;  %s2126_s17 = sphi %s2212_s17, %s2811_s17   ;;  %s2122_s16 = sphi %s2210_s16, %s2810_s16   ;;  %s2118_s15 = sphi %s2208_s15, %s2809_s15  }
   0xe   : > { %2784 = sst [smem:[#allocation14_spill]] %s2150_s23  ;;  %s1418_s27 = sadd.s32 4294967294, %s2158_s25  }
   0xf   : > { %p116_p0 = scmp.ne.s32.totalorder %s2134_s19, %s2130_s18  ;;  %p2264_p1 = scmp.eq.s32.totalorder %s1417_s26, 0 }
  0x10   : > { %p141_p2 = scmp.ne.s32.totalorder %s2126_s17, %s2122_s16  ;;  %p142_p4 = scmp.eq.s32.totalorder %s1417_s26, 3 }
  0x11   : > { %s2785_s28 = scalar_select %p2264_p1, 1, 0 }
  0x12   : > { %p2273_p3 = por %p2264_p1, %p116_p0  ;;  %p147_p5 = scmp.ne.s32.totalorder %s2122_s16, %s2118_s15 }
  0x13   : > { %p148_p6 = scmp.eq.s32.totalorder %s1418_s27, 3  ;;  %p2279_p7 = por %p142_p4, %p141_p2 }
  0x14   : > { %s2786_s30 = scalar_select %p2273_p3, 1, 0 }
  0x15   : > { %s2787_s5 = scalar_select %p2279_p7, 1, 0 }
  0x16   : > { %p1419_p8 = scmp.ge.s32.totalorder %s2158_s25, 1  ;;  %p2284_p9 = por %p148_p6, %p147_p5 }
  0x17   : > { %p155_p10 = scmp.lt.s32.totalorder %s2158_s25, 5  ;;  %s2160_s8 = smov [#allocation4]  }
  0x18   : > { %s2788_s6 = scalar_select %p2284_p9, 1, 0 }
  0x19   : > { %p2289_p11 = pnand %p1419_p8, %p155_p10  ;;  %s173_s9 = sshll.u32 %s2160_s8, 4  ;;  %s174_s9 = int_to_ptr.vmem [resolvable:$true] %s173_s9 }
  0x1a   : > { %2789 = sst [smem:[#allocation15_spill]] %s2788_s6  ;;  %s2792_s2 = sld [smem:[#allocation18_spill]] }
  0x1b   : > { %s2790_s7 = scalar_select %p2289_p11, 1, 0 }
  0x1c   : > { %p1547_p12 = pneg %p2289_p11 }
  0x1e   : > { %p2297_p13 = pnand %p1547_p12, %p2264_p1 }
  0x20   : > { %s1974_s13 = scalar_lea.hbm %s2792_s2, 1536  ;;  %p1976_p2 = pneg %p2297_p13 }
  0x21   : > { %p1975_p0 = scmp.ne.s32.totalorder %s2792_s2, %s1974_s13  ;;  %p1981_p6 = scmp.lt.u32.totalorder %s1974_s13, %s2792_s2 }
  0x23   : > { %p1977_p4 = pnand %p1976_p2, %p1975_p0 }
  0x25   : > { %p1978_p5 = pneg %p1977_p4 }
  0x27   : > { %p1983_p8 = pnand %p1981_p6, %p1978_p5 }
  0x29   : > { %1986 = shalt.err (!%p1983_p8)
}
  0x2a   : > { %s1987_s8 = scalar_lea.vmem %s174_s9, 1536  ;;  %p1995_p7 = scmp.lt.s32.totalorder %s174_s9, %s174_s9 }
  0x2b   : > { %p1988_p10 = scmp.ne.s32.totalorder %s174_s9, %s1987_s8  ;;  %p1996_p3 = scmp.lt.s32.totalorder %s1987_s8, %s1987_s8 }
  0x2d   : > { %p1990_p12 = pnand %p1988_p10, %p1976_p2  ;;  %p1997_p1 = por %p1996_p3, %p1995_p7 }
  0x2f   : > { %p1991_p9 = pneg %p1990_p12 }
  0x31   : > { %p1998_p11 = pnand %p1997_p1, %p1991_p9 }
  0x33   : > { %2001 = shalt.err (!%p1998_p11)
}
  0x34   : > { %s2161_s11 = smov 384   ;;  %s2162_s12 = smov 24  }
  0x35   : > { %1550 = dma.hbm_to_vmem [thread:$0]  (!%p2297_p13), %s2792_s2, 1536, %s174_s9, [#allocation5], %s2161_s11, %s2161_s11, %s2162_s12  }
  0x36   : > { %s30_s18 = sadd.s32 1, %s2150_s23  ;;  %s33_s26 = sadd.s32 1, %s2154_s24 }
  0x37   : > { %p31_p1 = scmp.ge.s32.totalorder %s30_s18, 2  ;;  %s103_s27 = sadd.s32 1, %s2138_s20 }
  0x38   : > { %p110_p3 = scmp.ne.s32.totalorder %s2138_s20, %s2134_s19  ;;  %p111_p7 = scmp.eq.s32.totalorder %s2158_s25, 0 }
  0x39   : > { %s2818_s18 = smov (%p31_p1, %s30_s18), 0  ;;  %s2820_s26 = smov (!%p31_p1, %s33_s26), %s2154_s24 }
  0x3a   : > { %2793 = sst [smem:[#allocation16_spill]] %s2818_s18  ;;  %s127_s10 = ssub.s32 %s2150_s23, %s2818_s18 }
  0x3b   : > { %p35_p9 = scmp.ge.s32.totalorder %s2820_s26, 2  ;;  %p1560_p11 = scmp.lt.s32.totalorder %s2158_s25, 4 }
  0x3c   : > { %p2329_p13 = por %p111_p7, %p110_p3  ;;  %s187_s8 = sand.u32 1, %s2138_s20  }
  0x3d   : > { %s2822_s26 = smov (%p35_p9, %s2820_s26), 0  ;;  %s1422_s11 = sshll.u32 %s187_s8, 7 }
  0x3e   : > { %2795 = sst [smem:[#allocation17_spill]] %s2822_s26  ;;  %s100_s12 = ssub.s32 %s2154_s24, %s2822_s26 }
  0x3f   : > { %p101_p0 = scmp.eq.s32.totalorder %s100_s12, 0  ;;  %s128_s13 = sor.u32 %s127_s10, %s100_s12 }
  0x40   : > { %p129_p2 = scmp.eq.s32.totalorder %s128_s13, 0  ;;  %s1441_s14 = sshll.u32 %s2154_s24, 11 }
  0x41   : > { %s2340_s29 = scalar_select %p101_p0, %s2138_s20, %s103_s27  }
  0x42   : > { %s2796_s2 = sadd.s32 1, %s2126_s17  ;;  %s2350_s15 = scalar_lea.hbm %s2768_s3, %s1441_s14 }
  0x43   : > { %s2345_s18 = scalar_select %p129_p2, %s2126_s17, %s2796_s2  }
  0x44   : > { %s191_s4 = scalar_lea.vmem [#allocation7], %s1422_s11  ;;  %p2358_p4 = pnand %p1560_p11, %p2329_p13 }
  0x45   : > { %s198_s26 = sshll.u32 %s191_s4, 4  ;;  %s2362_s2 = scalar_lea.sflag [#allocation8], %s187_s8  ;;  %s2352_s26 = int_to_ptr.vmem [resolvable:$true] %s198_s26 }
  0x46   : > { %s2002_s23 = scalar_lea.hbm %s2350_s15, 2048  ;;  %p2004_p6 = pneg %p2358_p4 }
  0x47   : > { %p2003_p5 = scmp.ne.s32.totalorder %s2350_s15, %s2002_s23  ;;  %s2007_s10 = scalar_lea.hbm %s2768_s3, 4096 }
  0x48   : > { %p2008_p12 = scmp.lt.u32.totalorder %s2350_s15, %s2768_s3  ;;  %p2009_p1 = scmp.lt.u32.totalorder %s2007_s10, %s2002_s23 }
  0x49   : > { %p2005_p8 = pnand %p2004_p6, %p2003_p5  ;;  %p2011_p7 = scmp.lt.u32.totalorder %s2002_s23, %s2350_s15 }
  0x4a   : > { %p2010_p3 = por %p2009_p1, %p2008_p12 }
  0x4b   : > { %p2006_p10 = pneg %p2005_p8 }
  0x4c   : > { %p2012_p9 = por %p2011_p7, %p2010_p3 }
  0x4e   : > { %p2013_p11 = pnand %p2012_p9, %p2006_p10 }
  0x50   : > { %2016 = shalt.err (!%p2013_p11)
}
  0x51   : > { %s2017_s8 = scalar_lea.vmem %s2352_s26, 2048  ;;  %s2163_s12 = smov [#allocation7]  }
  0x52   : > { %p2018_p13 = scmp.ne.s32.totalorder %s2352_s26, %s2017_s8  ;;  %s2022_s13 = sshll.u32 %s2163_s12, 4  ;;  %s2023_s13 = int_to_ptr.vmem [resolvable:$false] %s2022_s13 }
  0x53   : > { %s2024_s14 = scalar_lea.vmem %s2023_s13, 4096  ;;  %p2025_p5 = scmp.lt.s32.totalorder %s2352_s26, %s2023_s13 }
  0x54   : > { %p2020_p0 = pnand %p2018_p13, %p2004_p6  ;;  %p2026_p8 = scmp.lt.s32.totalorder %s2024_s14, %s2017_s8 }
  0x56   : > { %p2021_p2 = pneg %p2020_p0  ;;  %p2027_p12 = por %p2026_p8, %p2025_p5 }
  0x58   : > { %p2028_p1 = pnand %p2027_p12, %p2021_p2 }
  0x5a   : > { %2031 = shalt.err (!%p2028_p1)
}
  0x5b   : > { %s2164_s23 = smov 512   ;;  %s2165_s4 = smov 32  }
  0x5c   : > { %1554 = dma.hbm_to_vmem [thread:$0]  (!%p2358_p4), %s2350_s15, 2048, %s2352_s26, %s2362_s2, %s2164_s23, %s2164_s23, %s2165_s4  }
  0x5d   : > { %p2798_p6 = scmp.ne.s32.totalorder %s2790_s7, 0 }
  0x5e   : > { %p2799_p10 = scmp.ne.s32.totalorder (!%p2798_p6), %s2785_s28, 0 }
  0x5f   : > { %210 = sbr.rel (%p2798_p6) target bundleno = 888 (0x378), region = 36 }
  0x66   : > { %2105 = dma.done.wait (%p2799_p10), [#allocation5], 1536  }
  0x67   : > { %2107 = vsyncadd (%p2799_p10), [#allocation5], 4294965760  ;;  %s216_s6 = sand.u32 1, %s2134_s19   ;;  %p2800_p3 = scmp.ne.s32.totalorder %s2786_s30, 0 }
  0x68   : > { %s1427_s10 = sshll.u32 %s216_s6, 7  ;;  %s217_s9 = scalar_lea.sflag [#allocation8], %s216_s6 }
  0x69   : > { %s2397_s11 = scalar_lea.vmem [#allocation7], %s1427_s10 }
  0x6a   : > { %2109 = dma.done.wait (%p2800_p3), %s217_s9, 2048  }
  0x6b   : > { %2111 = vsyncadd (%p2800_p3), %s217_s9, 4294965248  ;;  %s242_s15 = sand.u32 1, %s2122_s16   ;;  %p1429_p4 = scmp.ne.s32.totalorder %s2142_s21, 0 }
  0x6c   : > { %s1428_s7 = sshll.u32 %s242_s15, 6  ;;  %v252_v0 = vld [vmem:[%s2765_s0 + $0x10] sm:$0xff] (!%p1429_p4)  ;;  %v250_v1 = vld [vmem:[%s2765_s0] sm:$0xff] (!%p1429_p4)  ;;  %v2166_v2 = vmov (!%p1429_p4), 0   ;;  %v253_v3 = vld [vmem:[%s2765_s0 + $0x18] sm:$0xff] (!%p1429_p4)  ;;  %s2167_s2 = smov (!%p1429_p4), 20  }
  0x6d   : > { %s2406_s26 = scalar_lea.vmem [#allocation9], %s1428_s7  ;;  %249 = sbr.rel (%p1429_p4) target bundleno = 396 (0x18c), region = 48  ;;  %1673 = vset.pattern.permute.xlu1 (!%p1429_p4), %v2166_v2  ;;  %1672 = vset.pattern.permute.xlu0 (!%p1429_p4), %v2166_v2  ;;  %v251_v4 = vld [vmem:[%s2765_s0 + $0x8] sm:$0xff] (!%p1429_p4)  ;;  %v254_v6 = vld [vmem:[%s2766_s1] sm:$0xff] (!%p1429_p4)  ;;  %v257_v7 = vld [vmem:[%s2766_s1 + $0x18] sm:$0xff] (!%p1429_p4)  ;;  %vm386_vm0 = vcmask (!%p1429_p4), 162816  }
  0x6e   : > { %286 = vperm.xlu1 (!%p1429_p4), %1673, %v252_v0   ;;  %276 = vperm.xlu0 (!%p1429_p4), %1672, %v250_v1   ;;  %v255_v5 = vld [vmem:[%s2766_s1 + $0x8] sm:$0xff] (!%p1429_p4)  ;;  %v256_v8 = vld [vmem:[%s2766_s1 + $0x10] sm:$0xff] (!%p1429_p4)  ;;  %v258_v11 = vld [vmem:[%s2397_s11] sm:$0xff] (!%p1429_p4)  ;;  %vm413_vm1 = vcmask (!%p1429_p4), 326656  }
  0x6f   : > { %v259_v12 = vld [vmem:[%s2397_s11 + $0x8] sm:$0xff] (!%p1429_p4)  ;;  %v260_v15 = vld [vmem:[%s2397_s11 + $0x10] sm:$0xff] (!%p1429_p4)  ;;  %v262_v16 = vld [vmem:[%s2397_s11 + $0x20] sm:$0xff] (!%p1429_p4) }
  0x70   : > { %v263_v25 = vld [vmem:[%s2397_s11 + $0x28] sm:$0xff] (!%p1429_p4)  ;;  %v264_v26 = vld [vmem:[%s2397_s11 + $0x30] sm:$0xff] (!%p1429_p4)  ;;  %v266_v33 = vld [vmem:[%s2397_s11 + $0x40] sm:$0xff] (!%p1429_p4) }
  0x71   : > { %v267_v34 = vld [vmem:[%s2397_s11 + $0x48] sm:$0xff] (!%p1429_p4)  ;;  %v268_v42 = vld [vmem:[%s2397_s11 + $0x50] sm:$0xff] (!%p1429_p4)  ;;  %v270_v43 = vld [vmem:[%s2397_s11 + $0x60] sm:$0xff] (!%p1429_p4) }
  0x72   : > { %291 = vperm.xlu1 (!%p1429_p4), %1673, %v253_v3   ;;  %281 = vperm.xlu0 (!%p1429_p4), %1672, %v251_v4   ;;  %v271_v51 = vld [vmem:[%s2397_s11 + $0x68] sm:$0xff] (!%p1429_p4)  ;;  %v272_v52 = vld [vmem:[%s2397_s11 + $0x70] sm:$0xff] (!%p1429_p4)  ;;  %v261_v59 = vld [vmem:[%s2397_s11 + $0x18] sm:$0xff] (!%p1429_p4) }
  0x73   : > { %v265_v60 = vld [vmem:[%s2397_s11 + $0x38] sm:$0xff] (!%p1429_p4) }
  0x74   : > { %v269_v3 = vld [vmem:[%s2397_s11 + $0x58] sm:$0xff] }
  0x75   : > { %v273_v4 = vld [vmem:[%s2397_s11 + $0x78] sm:$0xff] }
  0x76   : > { %313 = vperm.xlu1 %1673, %v255_v5   ;;  %308 = vperm.xlu0 %1672, %v254_v6  }
  0x7a   : > { %323 = vperm.xlu1 %1673, %v257_v7   ;;  %318 = vperm.xlu0 %1672, %v256_v8  }
  0xed   : > { %v2433_v9 = vpop.permute.xlu1 %286  ;;  %v2435_v10 = vpop.permute.xlu0 %276 }
  0xee   : > { %v294_v17 = vmul.f32 %v2435_v10, %v258_v11  ;;  %v295_v18 = vmul.f32 %v2435_v10, %v259_v12  ;;  %v296_v21 = vmul.f32 %v2435_v10, %v260_v15  ;;  %v300_v40 = vmul.f32 %v2433_v9, %v266_v33 }
  0xef   : > { %v301_v41 = vmul.f32 %v2433_v9, %v267_v34  ;;  %v302_v49 = vmul.f32 %v2433_v9, %v268_v42  ;;  %v424_v1 = vmul.f32 %v2435_v10, %v261_v59  ;;  %v426_v11 = vmul.f32 %v2433_v9, %v269_v3 }
  0xf1   : > { %v2439_v13 = vpop.permute.xlu1 %291  ;;  %v282_v14 = vpop.permute.xlu0 %281 }
  0xf2   : > { %v297_v22 = vmul.f32 %v282_v14, %v262_v16  ;;  %v298_v31 = vmul.f32 %v282_v14, %v263_v25  ;;  %v299_v32 = vmul.f32 %v282_v14, %v264_v26  ;;  %v303_v50 = vmul.f32 %v2439_v13, %v270_v43 }
  0xf3   : > { %v304_v57 = vmul.f32 %v2439_v13, %v271_v51  ;;  %v305_v58 = vmul.f32 %v2439_v13, %v272_v52  ;;  %v425_v2 = vmul.f32 %v282_v14, %v265_v60  ;;  %v427_v12 = vmul.f32 %v2439_v13, %v273_v4 }
  0xf5   : > { %v2445_v19 = vpop.permute.xlu1 %313  ;;  %v2447_v20 = vpop.permute.xlu0 %308 }
  0xf6   : > { %v327_v23 = vadd.f32 %v2447_v20, %v295_v18  ;;  %v326_v24 = vadd.f32 %v2447_v20, %v294_v17  ;;  %v329_v29 = vadd.f32 %v2445_v19, %v297_v22  ;;  %v328_v30 = vadd.f32 %v2447_v20, %v296_v21 }
  0xf7   : > { %v331_v37 = vadd.f32 %v2445_v19, %v299_v32  ;;  %v330_v38 = vadd.f32 %v2445_v19, %v298_v31  ;;  %v429_v7 = vadd.f32 %v425_v2, %v2445_v19  ;;  %v428_v8 = vadd.f32 %v424_v1, %v2447_v20 }
  0xf8   : > { %v339_v27 = vmax.f32 %v327_v23, 0.0  ;;  %v338_v28 = vmax.f32 %v326_v24, 0.0  ;;  %v341_v35 = vmax.f32 %v329_v29, 0.0  ;;  %v340_v36 = vmax.f32 %v328_v30, 0.0 }
  0xf9   : > { %v319_v39 = vpop.permute.xlu0 %318  ;;  %v343_v44 = vmax.f32 %v331_v37, 0.0  ;;  %v342_v45 = vmax.f32 %v330_v38, 0.0  ;;  %v324_v48 = vpop.permute.xlu1 %323  ;;  %v433_v10 = vmax.f32 %v429_v7, 0.0  ;;  %v432_v14 = vmax.f32 %v428_v8, 0.0 }
  0xfa   : > { %364 = vrot.lane.b32.xlu1 %v339_v27, %s2167_s2  ;;  %362 = vrot.lane.b32.xlu0 %v338_v28, %s2167_s2  ;;  %v333_v46 = vadd.f32 %v319_v39, %v301_v41  ;;  %v332_v47 = vadd.f32 %v319_v39, %v300_v40  ;;  %v335_v55 = vadd.f32 %v324_v48, %v303_v50 }
  0xfb   : > { %v334_v56 = vadd.f32 %v319_v39, %v302_v49  ;;  %v337_v63 = vadd.f32 %v324_v48, %v305_v58  ;;  %v336_v0 = vadd.f32 %v324_v48, %v304_v57  ;;  %v431_v15 = vadd.f32 %v427_v12, %v324_v48 }
  0xfc   : > { %v345_v53 = vmax.f32 %v333_v46, 0.0  ;;  %v344_v54 = vmax.f32 %v332_v47, 0.0  ;;  %v347_v61 = vmax.f32 %v335_v55, 0.0  ;;  %v430_v16 = vadd.f32 %v426_v11, %v319_v39 }
  0xfd   : > { %v346_v62 = vmax.f32 %v334_v56, 0.0  ;;  %v349_v5 = vmax.f32 %v337_v63, 0.0  ;;  %v348_v6 = vmax.f32 %v336_v0, 0.0  ;;  %v435_v17 = vmax.f32 %v431_v15, 0.0 }
  0xfe   : > { %368 = vrot.lane.b32.xlu1 %v341_v35, %s2167_s2  ;;  %366 = vrot.lane.b32.xlu0 %v340_v36, %s2167_s2  ;;  %v434_v18 = vmax.f32 %v430_v16, 0.0 }
 0x102   : > { %372 = vrot.lane.b32.xlu1 %v343_v44, %s2167_s2  ;;  %370 = vrot.lane.b32.xlu0 %v342_v45, %s2167_s2 }
 0x106   : > { %376 = vrot.lane.b32.xlu1 %v345_v53, %s2167_s2  ;;  %374 = vrot.lane.b32.xlu0 %v344_v54, %s2167_s2 }
 0x10a   : > { %380 = vrot.lane.b32.xlu1 %v347_v61, %s2167_s2  ;;  %378 = vrot.lane.b32.xlu0 %v346_v62, %s2167_s2 }
 0x10e   : > { %384 = vrot.lane.b32.xlu1 %v349_v5, %s2167_s2  ;;  %382 = vrot.lane.b32.xlu0 %v348_v6, %s2167_s2 }
 0x112   : > { %442 = vrot.lane.b32.xlu1 %v433_v10, %s2167_s2  ;;  %440 = vrot.lane.b32.xlu0 %v432_v14, %s2167_s2 }
 0x116   : > { %446 = vrot.lane.b32.xlu1 %v435_v17, %s2167_s2  ;;  %444 = vrot.lane.b32.xlu0 %v434_v18, %s2167_s2 }
 0x16c   : > { %v365_v9 = vpop.permute.xlu1 %364  ;;  %v363_v13 = vpop.permute.xlu0 %362 }
 0x16d   : > { %v387_v19 = vsel %vm386_vm0, %v363_v13, %v365_v9  ;;  %v407_v20 = vsel %vm386_vm0, 0.0, %v363_v13 }
 0x16e   : > { %411 = vst [vmem:[#allocation2] sm:$0xff] %v407_v20  ;;  %412 = vst [vmem:[#allocation2 + $0x8] sm:$0xff] %v387_v19 }
 0x170   : > { %v369_v21 = vpop.permute.xlu1 %368  ;;  %v367_v22 = vpop.permute.xlu0 %366 }
 0x171   : > { %v408_v23 = vsel %vm386_vm0, 0.0, %v369_v21  ;;  %v388_v24 = vsel %vm386_vm0, %v365_v9, %v367_v22 }
 0x172   : > { %415 = vst [vmem:[#allocation2 + $0x18] sm:$0xff] %v408_v23  ;;  %414 = vst.msk [vmem:[#allocation2 + $0x10] sm:$0xff] %vm413_vm1, %v388_v24 }
 0x173   : > { %465 = vst [vmem:[#allocation2 + $0x60] sm:$0xff] %v388_v24 }
 0x174   : > { %v373_v25 = vpop.permute.xlu1 %372  ;;  %v371_v26 = vpop.permute.xlu0 %370 }
 0x175   : > { %v389_v27 = vsel %vm386_vm0, %v369_v21, %v371_v26  ;;  %v390_v28 = vsel %vm386_vm0, %v371_v26, %v373_v25 }
 0x176   : > { %416 = vst [vmem:[#allocation2 + $0x20] sm:$0xff] %v389_v27  ;;  %417 = vst.msk [vmem:[#allocation2 + $0x28] sm:$0xff] %vm413_vm1, %v390_v28 }
 0x177   : > { %468 = vst [vmem:[#allocation2 + $0x78] sm:$0xff] %v390_v28 }
 0x178   : > { %v377_v29 = vpop.permute.xlu1 %376  ;;  %v375_v30 = vpop.permute.xlu0 %374 }
 0x179   : > { %v391_v31 = vsel %vm386_vm0, %v375_v30, %v377_v29  ;;  %v409_v32 = vsel %vm386_vm0, 0.0, %v375_v30 }
 0x17a   : > { %418 = vst [vmem:[#allocation2 + $0x30] sm:$0xff] %v409_v32  ;;  %419 = vst [vmem:[#allocation2 + $0x38] sm:$0xff] %v391_v31 }
 0x17c   : > { %v381_v33 = vpop.permute.xlu1 %380  ;;  %v379_v34 = vpop.permute.xlu0 %378 }
 0x17d   : > { %v410_v35 = vsel %vm386_vm0, 0.0, %v381_v33  ;;  %v392_v36 = vsel %vm386_vm0, %v377_v29, %v379_v34 }
 0x17e   : > { %421 = vst [vmem:[#allocation2 + $0x48] sm:$0xff] %v410_v35  ;;  %420 = vst.msk [vmem:[#allocation2 + $0x40] sm:$0xff] %vm413_vm1, %v392_v36 }
 0x17f   : > { %471 = vst [vmem:[#allocation2 + $0x90] sm:$0xff] %v392_v36 }
 0x180   : > { %v385_v37 = vpop.permute.xlu1 %384  ;;  %v383_v38 = vpop.permute.xlu0 %382 }
 0x181   : > { %v393_v39 = vsel %vm386_vm0, %v381_v33, %v383_v38  ;;  %v394_v40 = vsel %vm386_vm0, %v383_v38, %v385_v37 }
 0x182   : > { %422 = vst [vmem:[#allocation2 + $0x50] sm:$0xff] %v393_v39  ;;  %423 = vst.msk [vmem:[#allocation2 + $0x58] sm:$0xff] %vm413_vm1, %v394_v40 }
 0x183   : > { %474 = vst [vmem:[#allocation2 + $0xa8] sm:$0xff] %v394_v40 }
 0x184   : > { %v443_v41 = vpop.permute.xlu1 %442  ;;  %v441_v42 = vpop.permute.xlu0 %440 }
 0x185   : > { %v449_v43 = vsel %vm386_vm0, %v373_v25, %v443_v41  ;;  %v461_v44 = vsel %vm386_vm0, %v443_v41, 0.0  ;;  %v448_v45 = vsel %vm386_vm0, %v367_v22, %v441_v42  ;;  %v460_v46 = vsel %vm386_vm0, %v441_v42, 0.0 }
 0x186   : > { %469 = vst [vmem:[#allocation2 + $0x80] sm:$0xff] %v449_v43  ;;  %470 = vst.msk [vmem:[#allocation2 + $0x88] sm:$0xff] %vm413_vm1, %v461_v44 }
 0x187   : > { %466 = vst [vmem:[#allocation2 + $0x68] sm:$0xff] %v448_v45  ;;  %467 = vst.msk [vmem:[#allocation2 + $0x70] sm:$0xff] %vm413_vm1, %v460_v46 }
 0x188   : > { %v447_v47 = vpop.permute.xlu1 %446  ;;  %v445_v48 = vpop.permute.xlu0 %444 }
 0x189   : > { %v451_v49 = vsel %vm386_vm0, %v385_v37, %v447_v47  ;;  %v463_v50 = vsel %vm386_vm0, %v447_v47, 0.0  ;;  %v450_v51 = vsel %vm386_vm0, %v379_v34, %v445_v48  ;;  %v462_v52 = vsel %vm386_vm0, %v445_v48, 0.0 }
 0x18a   : > { %475 = vst [vmem:[#allocation2 + $0xb0] sm:$0xff] %v451_v49  ;;  %476 = vst.msk [vmem:[#allocation2 + $0xb8] sm:$0xff] %vm413_vm1, %v463_v50 }
 0x18b   : > { %472 = vst [vmem:[#allocation2 + $0x98] sm:$0xff] %v450_v51  ;;  %473 = vst.msk [vmem:[#allocation2 + $0xa0] sm:$0xff] %vm413_vm1, %v462_v52 }
 0x18c PF: > { %s1442_s11 = smul.u32 96, %s2142_s21  ;;  %s2168_s30 = smov 124   ;;  %v1003_v10 = vld [vmem:[#allocation4 + $0x8] sm:$0xff]  ;;  %v2178_v14 = vmov 0.0   ;;  %vm536_vm2 = vcmask 1014784   ;;  %vm585_vm3 = vcmask 982016  }
 0x18d   : > { %s2169_s12 = smov 120   ;;  %s2170_s13 = smov 116   ;;  %1178 = vmatprep.mubr.f32.mxu1 %v1003_v10  ;;  %1267 = vmatprep.mubr.f32.mxu0 %v2178_v14  ;;  %vm634_vm4 = vcmask 949248   ;;  %vm683_vm5 = vcmask 916480   ;;  %vm732_vm6 = vcmask 883712   ;;  %vm879_vm7 = vcmask 785408  }
 0x18e   : > { %s479_s8 = scalar_lea.vmem [#allocation2], %s1442_s11  ;;  %s2171_s14 = smov 112   ;;  %vm781_vm8 = vcmask 850944   ;;  %vm928_vm9 = vcmask 752640   ;;  %vm830_vm10 = vcmask 818176   ;;  %vm977_vm11 = vcmask 719872  }
 0x18f   : > { %s2172_s23 = smov 108   ;;  %s2173_s4 = smov 96  }
 0x190   : > { %s2174_s6 = smov 104   ;;  %s2175_s10 = smov 92  }
 0x191   : > { %s2176_s9 = smov 100   ;;  %s2177_s7 = smov 88  }
 0x192   : > { %v481_v53 = vld [vmem:[%s479_s8 + $0x8] sm:$0xff]  ;;  %v482_v54 = vld [vmem:[%s479_s8 + $0x10] sm:$0xff]  ;;  %v480_v55 = vld [vmem:[%s479_s8] sm:$0xff]  ;;  %s1436_s28 = sshll.u32 %s2142_s21, 1  ;;  %s1437_s27 = sshll.u32 %s2146_s22, 4 }
 0x193   : > { %v2524_v56 = vpack.i.bf16 %v482_v54, %v481_v53  ;;  %v483_v57 = vld [vmem:[%s479_s8 + $0x18] sm:$0xff]  ;;  %v484_v58 = vld [vmem:[%s479_s8 + $0x20] sm:$0xff]  ;;  %v485_v59 = vld [vmem:[%s479_s8 + $0x28] sm:$0xff]  ;;  %s1313_s2 = sadd.s32 %s1437_s27, %s1436_s28  ;;  %s1316_s22 = sshll.u32 %s2406_s26, 4  ;;  %s2698_s22 = int_to_ptr.vmem [resolvable:$true] %s1316_s22 }
 0x194   : > { %v2526_v60 = vpack.i.bf16 %v483_v57, %v480_v55  ;;  %v487_v61 = vld [vmem:[%s479_s8 + $0x38] sm:$0xff]  ;;  %v488_v62 = vld [vmem:[%s479_s8 + $0x40] sm:$0xff]  ;;  %v2529_v63 = vpack.i.bf16 %v485_v59, %v484_v58  ;;  %v490_v1 = vld [vmem:[%s479_s8 + $0x50] sm:$0xff]  ;;  %v1443_v7 = vpack.c.bf16 %v484_v58, %v481_v53  ;;  %v1445_v8 = vpack.c.bf16 %v483_v57, %v480_v55  ;;  %s1438_s21 = sshll.u32 %s1313_s2, 7  ;;  %p2802_p9 = scmp.ne.s32.totalorder %s2787_s5, 0 }
 0x195   : > { %1675 = vrot.lane.b32.xlu0 %v2524_v56, %s2168_s30  ;;  %v2532_v0 = vpack.i.bf16 %v488_v62, %v487_v61  ;;  %v491_v2 = vld [vmem:[%s479_s8 + $0x58] sm:$0xff]  ;;  %v486_v3 = vld [vmem:[%s479_s8 + $0x30] sm:$0xff]  ;;  %v489_v4 = vld [vmem:[%s479_s8 + $0x48] sm:$0xff]  ;;  %v1447_v11 = vpack.c.bf16 %v490_v1, %v487_v61 }
 0x196   : > { %1685 = vrot.lane.b32.xlu1 %v2526_v60, %s2168_s30  ;;  %v2535_v5 = vpack.i.bf16 %v491_v2, %v490_v1  ;;  %v2538_v6 = vpack.i.bf16 %v489_v4, %v486_v3  ;;  %1444 = vmatprep.subr.bf16.mxu1 %v1443_v7  ;;  %v1449_v12 = vpack.c.bf16 %v489_v4, %v486_v3 }
 0x197   : > { %1446 = vmatpush1.bf16.msra.mxu1 %v1445_v8 }
 0x198   : > { %1448 = vmatprep.subr.bf16.mxu1 %v1447_v11 }
 0x199   : > { %1680 = vrot.lane.b32.xlu0 %v2529_v63, %s2168_s30 }
 0x19a   : > { %1690 = vrot.lane.b32.xlu1 %v2532_v0, %s2168_s30 }
 0x19b   : > { %1450 = vmatpush1.bf16.msra.mxu1 %v1449_v12 }
 0x19d   : > { %1695 = vrot.lane.b32.xlu0 %v2535_v5, %s2168_s30 }
 0x19e   : > { %1700 = vrot.lane.b32.xlu1 %v2538_v6, %s2168_s30  ;;  %s2801_s30 = sld [smem:[#allocation19_spill]] }
 0x1a1   : > { %1705 = vrot.lane.b32.xlu0 %v2524_v56, %s2169_s12 }
 0x1a2   : > { %1710 = vrot.lane.b32.xlu1 %v2529_v63, %s2169_s12 }
 0x1a5   : > { %1715 = vrot.lane.b32.xlu0 %v2526_v60, %s2169_s12 }
 0x1a6   : > { %1720 = vrot.lane.b32.xlu1 %v2532_v0, %s2169_s12 }
 0x1a9   : > { %1725 = vrot.lane.b32.xlu0 %v2535_v5, %s2169_s12 }
 0x1aa   : > { %1730 = vrot.lane.b32.xlu1 %v2538_v6, %s2169_s12  ;;  %s2696_s12 = scalar_lea.hbm %s2801_s30, %s1438_s21 }
 0x1ad   : > { %1735 = vrot.lane.b32.xlu0 %v2524_v56, %s2170_s13 }
 0x1ae   : > { %1740 = vrot.lane.b32.xlu1 %v2529_v63, %s2170_s13 }
 0x1b1   : > { %1745 = vrot.lane.b32.xlu0 %v2526_v60, %s2170_s13 }
 0x1b2   : > { %1750 = vrot.lane.b32.xlu1 %v2532_v0, %s2170_s13 }
 0x1b5   : > { %1755 = vrot.lane.b32.xlu0 %v2535_v5, %s2170_s13 }
 0x1b6   : > { %1760 = vrot.lane.b32.xlu1 %v2538_v6, %s2170_s13  ;;  %s2704_s13 = scalar_lea.sflag [#allocation6], %s242_s15 }
 0x1b9   : > { %1765 = vrot.lane.b32.xlu0 %v2524_v56, %s2171_s14 }
 0x1ba   : > { %1770 = vrot.lane.b32.xlu1 %v2529_v63, %s2171_s14 }
 0x1bd   : > { %1775 = vrot.lane.b32.xlu0 %v2526_v60, %s2171_s14 }
 0x1be   : > { %1780 = vrot.lane.b32.xlu1 %v2532_v0, %s2171_s14 }
 0x1c1   : > { %1785 = vrot.lane.b32.xlu0 %v2535_v5, %s2171_s14 }
 0x1c2   : > { %1790 = vrot.lane.b32.xlu1 %v2538_v6, %s2171_s14  ;;  %s2032_s14 = scalar_lea.vmem %s2698_s22, 1024 }
 0x1c3   : > { %p2033_p7 = scmp.ne.s32.totalorder %s2698_s22, %s2032_s14 }
 0x1c5   : > { %1795 = vrot.lane.b32.xlu0 %v2524_v56, %s2172_s23  ;;  %p2034_p11 = pnand %p2033_p7, %p2802_p9 }
 0x1c6   : > { %1800 = vrot.lane.b32.xlu1 %v2529_v63, %s2172_s23 }
 0x1c7   : > { %p2035_p13 = pneg %p2034_p11 }
 0x1c9   : > { %1805 = vrot.lane.b32.xlu0 %v2524_v56, %s2173_s4 }
 0x1ca   : > { %1810 = vrot.lane.b32.xlu1 %v2529_v63, %s2173_s4 }
 0x1cd   : > { %1815 = vrot.lane.b32.xlu0 %v2526_v60, %s2172_s23 }
 0x1ce   : > { %1820 = vrot.lane.b32.xlu1 %v2526_v60, %s2173_s4 }
 0x1d1   : > { %1825 = vrot.lane.b32.xlu0 %v2532_v0, %s2172_s23 }
 0x1d2   : > { %1830 = vrot.lane.b32.xlu1 %v2535_v5, %s2172_s23 }
 0x1d5   : > { %1835 = vrot.lane.b32.xlu0 %v2532_v0, %s2173_s4 }
 0x1d6   : > { %1840 = vrot.lane.b32.xlu1 %v2535_v5, %s2173_s4 }
 0x1d9   : > { %1845 = vrot.lane.b32.xlu0 %v2538_v6, %s2172_s23  ;;  %s2179_s23 = smov [#allocation9]  }
 0x1da   : > { %1850 = vrot.lane.b32.xlu1 %v2538_v6, %s2173_s4  ;;  %s2036_s4 = sshll.u32 %s2179_s23, 4  ;;  %s2037_s4 = int_to_ptr.vmem [resolvable:$false] %s2036_s4 }
 0x1db   : > { %p2039_p0 = scmp.lt.s32.totalorder %s2698_s22, %s2037_s4 }
 0x1dd   : > { %1855 = vrot.lane.b32.xlu0 %v2524_v56, %s2174_s6 }
 0x1de   : > { %1860 = vrot.lane.b32.xlu1 %v2529_v63, %s2174_s6 }
 0x1e1   : > { %1865 = vrot.lane.b32.xlu0 %v2524_v56, %s2175_s10 }
 0x1e2   : > { %1870 = vrot.lane.b32.xlu1 %v2529_v63, %s2175_s10 }
 0x1e5   : > { %1875 = vrot.lane.b32.xlu0 %v2526_v60, %s2174_s6 }
 0x1e6   : > { %1880 = vrot.lane.b32.xlu1 %v2526_v60, %s2175_s10 }
 0x1e9   : > { %1885 = vrot.lane.b32.xlu0 %v2532_v0, %s2174_s6 }
 0x1ea   : > { %1890 = vrot.lane.b32.xlu1 %v2535_v5, %s2174_s6 }
 0x1ed   : > { %1895 = vrot.lane.b32.xlu0 %v2532_v0, %s2175_s10 }
 0x1ee   : > { %1900 = vrot.lane.b32.xlu1 %v2535_v5, %s2175_s10 }
 0x1f1   : > { %1905 = vrot.lane.b32.xlu0 %v2538_v6, %s2174_s6  ;;  %s2038_s6 = scalar_lea.vmem %s2037_s4, 2048 }
 0x1f2   : > { %1910 = vrot.lane.b32.xlu1 %v2538_v6, %s2175_s10  ;;  %p2040_p2 = scmp.lt.s32.totalorder %s2038_s6, %s2032_s14 }
 0x1f4   : > { %p2041_p5 = por %p2040_p2, %p2039_p0 }
 0x1f5   : > { %1915 = vrot.lane.b32.xlu0 %v2524_v56, %s2176_s9 }
 0x1f6   : > { %1920 = vrot.lane.b32.xlu1 %v2529_v63, %s2176_s9  ;;  %p2042_p8 = pnand %p2041_p5, %p2035_p13 }
 0x1f9   : > { %1925 = vrot.lane.b32.xlu0 %v2524_v56, %s2177_s7 }
 0x1fa   : > { %1930 = vrot.lane.b32.xlu1 %v2529_v63, %s2177_s7 }
 0x1fd   : > { %1935 = vrot.lane.b32.xlu0 %v2526_v60, %s2176_s9 }
 0x1fe   : > { %1940 = vrot.lane.b32.xlu1 %v2526_v60, %s2177_s7 }
 0x201   : > { %1945 = vrot.lane.b32.xlu0 %v2532_v0, %s2176_s9 }
 0x202   : > { %1950 = vrot.lane.b32.xlu1 %v2535_v5, %s2176_s9 }
 0x205   : > { %1955 = vrot.lane.b32.xlu0 %v2532_v0, %s2177_s7 }
 0x206   : > { %1960 = vrot.lane.b32.xlu1 %v2535_v5, %s2177_s7 }
 0x207   : > { %v1676_v15 = vpop.permute.xlu0 %1675 }
 0x208   : > { %v1686_v16 = vpop.permute.xlu1 %1685  ;;  %v1678_v17 = vunpack.i.h.bf16 %v1676_v15  ;;  %v1677_v18 = vunpack.i.l.bf16 %v1676_v15 }
 0x209   : > { %v1687_v9 = vunpack.i.l.bf16 %v1686_v16  ;;  %1965 = vrot.lane.b32.xlu0 %v2538_v6, %s2176_s9  ;;  %v1688_v19 = vunpack.i.h.bf16 %v1686_v16 }
 0x20a   : > { %1970 = vrot.lane.b32.xlu1 %v2538_v6, %s2177_s7  ;;  %v538_v23 = vsel %vm536_vm2, %v1677_v18, %v1678_v17 }
 0x20b   : > { %v1681_v13 = vpop.permute.xlu0 %1680  ;;  %v537_v24 = vsel %vm536_vm2, %v1687_v9, %v1677_v18 }
 0x20c   : > { %v1683_v20 = vunpack.i.h.bf16 %v1681_v13  ;;  %v1682_v21 = vunpack.i.l.bf16 %v1681_v13  ;;  %v1691_v22 = vpop.permute.xlu1 %1690 }
 0x20d   : > { %v1693_v25 = vunpack.i.h.bf16 %v1691_v22  ;;  %v1692_v26 = vunpack.i.l.bf16 %v1691_v22 }
 0x20e   : > { %v540_v27 = vsel %vm536_vm2, %v1682_v21, %v1683_v20  ;;  %v539_v28 = vsel %vm536_vm2, %v1688_v19, %v1682_v21 }
 0x20f   : > { %v1696_v29 = vpop.permute.xlu0 %1695  ;;  %v1451_v30 = vpack.c.bf16 %v540_v27, %v538_v23  ;;  %v1453_v31 = vpack.c.bf16 %v539_v28, %v537_v24  ;;  %v542_v37 = vsel %vm536_vm2, %v1692_v26, %v1693_v25 }
 0x210   : > { %v1698_v32 = vunpack.i.h.bf16 %v1696_v29  ;;  %v1697_v33 = vunpack.i.l.bf16 %v1696_v29  ;;  %v1701_v34 = vpop.permute.xlu1 %1700 }
 0x211   : > { %v1703_v35 = vunpack.i.h.bf16 %v1701_v34  ;;  %v1702_v36 = vunpack.i.l.bf16 %v1701_v34  ;;  %1452 = vmatprep.subr.bf16.mxu1 %v1451_v30 }
 0x212   : > { %1454 = vmatpush1.bf16.msra.mxu1 %v1453_v31  ;;  %v544_v38 = vsel %vm536_vm2, %v1697_v33, %v1698_v32 }
 0x213   : > { %v1706_v39 = vpop.permute.xlu0 %1705  ;;  %v1455_v40 = vpack.c.bf16 %v544_v38, %v542_v37  ;;  %v541_v41 = vsel %vm536_vm2, %v1702_v36, %v1692_v26  ;;  %v543_v42 = vsel %vm536_vm2, %v1703_v35, %v1697_v33 }
 0x214   : > { %v1708_v43 = vunpack.i.h.bf16 %v1706_v39  ;;  %v1707_v44 = vunpack.i.l.bf16 %v1706_v39  ;;  %v1711_v45 = vpop.permute.xlu1 %1710  ;;  %v1457_v46 = vpack.c.bf16 %v543_v42, %v541_v41 }
 0x215   : > { %v1713_v47 = vunpack.i.h.bf16 %v1711_v45  ;;  %v1712_v48 = vunpack.i.l.bf16 %v1711_v45  ;;  %1456 = vmatprep.subr.bf16.mxu1 %v1455_v40 }
 0x216   : > { %1458 = vmatpush1.bf16.msra.mxu1 %v1457_v46  ;;  %v587_v49 = vsel %vm585_vm3, %v1707_v44, %v1708_v43 }
 0x217   : > { %v1716_v50 = vpop.permute.xlu0 %1715  ;;  %v589_v51 = vsel %vm585_vm3, %v1712_v48, %v1713_v47 }
 0x218   : > { %v1718_v52 = vunpack.i.h.bf16 %v1716_v50  ;;  %v1717_v53 = vunpack.i.l.bf16 %v1716_v50  ;;  %v1721_v54 = vpop.permute.xlu1 %1720  ;;  %v1459_v55 = vpack.c.bf16 %v589_v51, %v587_v49 }
 0x219   : > { %v1723_v56 = vunpack.i.h.bf16 %v1721_v54  ;;  %v1722_v57 = vunpack.i.l.bf16 %v1721_v54 }
 0x21a   : > { %1460 = vmatprep.subr.bf16.mxu1 %v1459_v55  ;;  %v586_v58 = vsel %vm585_vm3, %v1717_v53, %v1707_v44  ;;  %v588_v59 = vsel %vm585_vm3, %v1718_v52, %v1712_v48 }
 0x21b   : > { %v1726_v60 = vpop.permute.xlu0 %1725  ;;  %v1461_v61 = vpack.c.bf16 %v588_v59, %v586_v58  ;;  %v591_v3 = vsel %vm585_vm3, %v1722_v57, %v1723_v56 }
 0x21c   : > { %v1728_v62 = vunpack.i.h.bf16 %v1726_v60  ;;  %v1727_v63 = vunpack.i.l.bf16 %v1726_v60  ;;  %v1731_v0 = vpop.permute.xlu1 %1730 }
 0x21d   : > { %v1733_v1 = vunpack.i.h.bf16 %v1731_v0  ;;  %v1732_v2 = vunpack.i.l.bf16 %v1731_v0  ;;  %1462 = vmatpush1.bf16.msra.mxu1 %v1461_v61 }
 0x21e   : > { %v593_v4 = vsel %vm585_vm3, %v1727_v63, %v1728_v62 }
 0x21f   : > { %v1736_v5 = vpop.permute.xlu0 %1735  ;;  %v1463_v6 = vpack.c.bf16 %v593_v4, %v591_v3  ;;  %v590_v7 = vsel %vm585_vm3, %v1732_v2, %v1722_v57  ;;  %v592_v8 = vsel %vm585_vm3, %v1733_v1, %v1727_v63 }
 0x220   : > { %v1738_v11 = vunpack.i.h.bf16 %v1736_v5  ;;  %v1737_v12 = vunpack.i.l.bf16 %v1736_v5  ;;  %v1741_v10 = vpop.permute.xlu1 %1740  ;;  %v1465_v15 = vpack.c.bf16 %v592_v8, %v590_v7 }
 0x221   : > { %v1743_v16 = vunpack.i.h.bf16 %v1741_v10  ;;  %v1742_v17 = vunpack.i.l.bf16 %v1741_v10  ;;  %1464 = vmatprep.subr.bf16.mxu1 %v1463_v6 }
 0x222   : > { %1466 = vmatpush1.bf16.msra.mxu1 %v1465_v15  ;;  %v636_v18 = vsel %vm634_vm4, %v1737_v12, %v1738_v11 }
 0x223   : > { %v1746_v9 = vpop.permute.xlu0 %1745  ;;  %v638_v13 = vsel %vm634_vm4, %v1742_v17, %v1743_v16 }
 0x224   : > { %v1748_v19 = vunpack.i.h.bf16 %v1746_v9  ;;  %v1747_v20 = vunpack.i.l.bf16 %v1746_v9  ;;  %v1751_v21 = vpop.permute.xlu1 %1750  ;;  %v1467_v22 = vpack.c.bf16 %v638_v13, %v636_v18 }
 0x225   : > { %v1753_v23 = vunpack.i.h.bf16 %v1751_v21  ;;  %v1752_v24 = vunpack.i.l.bf16 %v1751_v21 }
 0x226   : > { %1468 = vmatprep.subr.bf16.mxu1 %v1467_v22  ;;  %v635_v25 = vsel %vm634_vm4, %v1747_v20, %v1737_v12  ;;  %v637_v26 = vsel %vm634_vm4, %v1748_v19, %v1742_v17 }
 0x227   : > { %v1756_v27 = vpop.permute.xlu0 %1755  ;;  %v1469_v28 = vpack.c.bf16 %v637_v26, %v635_v25  ;;  %v640_v34 = vsel %vm634_vm4, %v1752_v24, %v1753_v23 }
 0x228   : > { %v1758_v29 = vunpack.i.h.bf16 %v1756_v27  ;;  %v1757_v30 = vunpack.i.l.bf16 %v1756_v27  ;;  %v1761_v31 = vpop.permute.xlu1 %1760 }
 0x229   : > { %v1763_v32 = vunpack.i.h.bf16 %v1761_v31  ;;  %v1762_v33 = vunpack.i.l.bf16 %v1761_v31  ;;  %1470 = vmatpush1.bf16.msra.mxu1 %v1469_v28 }
 0x22a   : > { %v642_v35 = vsel %vm634_vm4, %v1757_v30, %v1758_v29 }
 0x22b   : > { %v1766_v36 = vpop.permute.xlu0 %1765  ;;  %v1471_v37 = vpack.c.bf16 %v642_v35, %v640_v34  ;;  %v639_v38 = vsel %vm634_vm4, %v1762_v33, %v1752_v24  ;;  %v641_v39 = vsel %vm634_vm4, %v1763_v32, %v1757_v30 }
 0x22c   : > { %v1768_v40 = vunpack.i.h.bf16 %v1766_v36  ;;  %v1767_v41 = vunpack.i.l.bf16 %v1766_v36  ;;  %v1771_v42 = vpop.permute.xlu1 %1770  ;;  %v1473_v43 = vpack.c.bf16 %v641_v39, %v639_v38 }
 0x22d   : > { %v1773_v44 = vunpack.i.h.bf16 %v1771_v42  ;;  %v1772_v45 = vunpack.i.l.bf16 %v1771_v42  ;;  %1472 = vmatprep.subr.bf16.mxu1 %v1471_v37 }
 0x22e   : > { %1474 = vmatpush1.bf16.msra.mxu1 %v1473_v43  ;;  %v685_v46 = vsel %vm683_vm5, %v1767_v41, %v1768_v40 }
 0x22f   : > { %v1776_v47 = vpop.permute.xlu0 %1775  ;;  %v687_v48 = vsel %vm683_vm5, %v1772_v45, %v1773_v44 }
 0x230   : > { %v1778_v49 = vunpack.i.h.bf16 %v1776_v47  ;;  %v1777_v50 = vunpack.i.l.bf16 %v1776_v47  ;;  %v1781_v51 = vpop.permute.xlu1 %1780  ;;  %v1475_v52 = vpack.c.bf16 %v687_v48, %v685_v46 }
 0x231   : > { %v1783_v53 = vunpack.i.h.bf16 %v1781_v51  ;;  %v1782_v54 = vunpack.i.l.bf16 %v1781_v51 }
 0x232   : > { %1476 = vmatprep.subr.bf16.mxu1 %v1475_v52  ;;  %v684_v55 = vsel %vm683_vm5, %v1777_v50, %v1767_v41  ;;  %v686_v56 = vsel %vm683_vm5, %v1778_v49, %v1772_v45 }
 0x233   : > { %v1786_v57 = vpop.permute.xlu0 %1785  ;;  %v1477_v58 = vpack.c.bf16 %v686_v56, %v684_v55  ;;  %v689_v0 = vsel %vm683_vm5, %v1782_v54, %v1783_v53 }
 0x234   : > { %v1788_v59 = vunpack.i.h.bf16 %v1786_v57  ;;  %v1787_v60 = vunpack.i.l.bf16 %v1786_v57  ;;  %v1791_v61 = vpop.permute.xlu1 %1790 }
 0x235   : > { %v1793_v62 = vunpack.i.h.bf16 %v1791_v61  ;;  %v1792_v63 = vunpack.i.l.bf16 %v1791_v61  ;;  %1478 = vmatpush1.bf16.msra.mxu1 %v1477_v58 }
 0x236   : > { %v691_v1 = vsel %vm683_vm5, %v1787_v60, %v1788_v59 }
 0x237   : > { %v1796_v2 = vpop.permute.xlu0 %1795  ;;  %v1479_v3 = vpack.c.bf16 %v691_v1, %v689_v0  ;;  %v688_v4 = vsel %vm683_vm5, %v1792_v63, %v1782_v54  ;;  %v690_v5 = vsel %vm683_vm5, %v1793_v62, %v1787_v60 }
 0x238   : > { %v1798_v6 = vunpack.i.h.bf16 %v1796_v2  ;;  %v1797_v7 = vunpack.i.l.bf16 %v1796_v2  ;;  %v1801_v8 = vpop.permute.xlu1 %1800  ;;  %v1481_v11 = vpack.c.bf16 %v690_v5, %v688_v4 }
 0x239   : > { %v1803_v12 = vunpack.i.h.bf16 %v1801_v8  ;;  %v1802_v10 = vunpack.i.l.bf16 %v1801_v8  ;;  %1480 = vmatprep.subr.bf16.mxu1 %v1479_v3 }
 0x23a   : > { %1482 = vmatpush1.bf16.msra.mxu1 %v1481_v11  ;;  %v734_v15 = vsel %vm732_vm6, %v1797_v7, %v1798_v6 }
 0x23b   : > { %v1806_v16 = vpop.permute.xlu0 %1805  ;;  %v736_v17 = vsel %vm732_vm6, %v1802_v10, %v1803_v12 }
 0x23c   : > { %v1808_v18 = vunpack.i.h.bf16 %v1806_v16  ;;  %v1807_v9 = vunpack.i.l.bf16 %v1806_v16  ;;  %v1811_v13 = vpop.permute.xlu1 %1810  ;;  %v1483_v19 = vpack.c.bf16 %v736_v17, %v734_v15 }
 0x23d   : > { %v1813_v20 = vunpack.i.h.bf16 %v1811_v13  ;;  %v1812_v21 = vunpack.i.l.bf16 %v1811_v13 }
 0x23e   : > { %1484 = vmatprep.subr.bf16.mxu1 %v1483_v19  ;;  %v881_v22 = vsel %vm879_vm7, %v1807_v9, %v1808_v18 }
 0x23f   : > { %v1816_v23 = vpop.permute.xlu0 %1815  ;;  %v883_v24 = vsel %vm879_vm7, %v1812_v21, %v1813_v20 }
 0x240   : > { %v1818_v25 = vunpack.i.h.bf16 %v1816_v23  ;;  %v1817_v26 = vunpack.i.l.bf16 %v1816_v23  ;;  %v1821_v27 = vpop.permute.xlu1 %1820  ;;  %v1507_v28 = vpack.c.bf16 %v883_v24, %v881_v22 }
 0x241   : > { %v1823_v29 = vunpack.i.h.bf16 %v1821_v27  ;;  %v1822_v30 = vunpack.i.l.bf16 %v1821_v27 }
 0x242   : > { %1508 = vmatprep.subr.bf16.mxu0 %v1507_v28  ;;  %v733_v31 = vsel %vm732_vm6, %v1817_v26, %v1797_v7  ;;  %v735_v32 = vsel %vm732_vm6, %v1818_v25, %v1802_v10 }
 0x243   : > { %v1826_v33 = vpop.permute.xlu0 %1825  ;;  %v1485_v34 = vpack.c.bf16 %v735_v32, %v733_v31  ;;  %v880_v35 = vsel %vm879_vm7, %v1822_v30, %v1807_v9  ;;  %v882_v36 = vsel %vm879_vm7, %v1823_v29, %v1812_v21 }
 0x244   : > { %v1828_v37 = vunpack.i.h.bf16 %v1826_v33  ;;  %v1827_v38 = vunpack.i.l.bf16 %v1826_v33  ;;  %v1831_v39 = vpop.permute.xlu1 %1830  ;;  %v1509_v40 = vpack.c.bf16 %v882_v36, %v880_v35 }
 0x245   : > { %v1833_v41 = vunpack.i.h.bf16 %v1831_v39  ;;  %v1832_v42 = vunpack.i.l.bf16 %v1831_v39  ;;  %1486 = vmatpush1.bf16.msra.mxu1 %v1485_v34 }
 0x246   : > { %1510 = vmatpush1.bf16.msra.mxu0 %v1509_v40  ;;  %v738_v43 = vsel %vm732_vm6, %v1827_v38, %v1828_v37 }
 0x247   : > { %v1836_v44 = vpop.permute.xlu0 %1835  ;;  %v740_v45 = vsel %vm732_vm6, %v1832_v42, %v1833_v41 }
 0x248   : > { %v1838_v46 = vunpack.i.h.bf16 %v1836_v44  ;;  %v1837_v47 = vunpack.i.l.bf16 %v1836_v44  ;;  %v1841_v48 = vpop.permute.xlu1 %1840  ;;  %v1487_v49 = vpack.c.bf16 %v740_v45, %v738_v43 }
 0x249   : > { %v1843_v50 = vunpack.i.h.bf16 %v1841_v48  ;;  %v1842_v51 = vunpack.i.l.bf16 %v1841_v48 }
 0x24a   : > { %1488 = vmatprep.subr.bf16.mxu1 %v1487_v49  ;;  %v885_v52 = vsel %vm879_vm7, %v1837_v47, %v1838_v46 }
 0x24b   : > { %v1846_v53 = vpop.permute.xlu0 %1845  ;;  %v887_v54 = vsel %vm879_vm7, %v1842_v51, %v1843_v50 }
 0x24c   : > { %v1848_v55 = vunpack.i.h.bf16 %v1846_v53  ;;  %v1847_v56 = vunpack.i.l.bf16 %v1846_v53  ;;  %v1851_v57 = vpop.permute.xlu1 %1850  ;;  %v1511_v58 = vpack.c.bf16 %v887_v54, %v885_v52 }
 0x24d   : > { %v1853_v59 = vunpack.i.h.bf16 %v1851_v57  ;;  %v1852_v60 = vunpack.i.l.bf16 %v1851_v57 }
 0x24e   : > { %1512 = vmatprep.subr.bf16.mxu0 %v1511_v58  ;;  %v737_v61 = vsel %vm732_vm6, %v1847_v56, %v1827_v38  ;;  %v739_v62 = vsel %vm732_vm6, %v1848_v55, %v1832_v42 }
 0x24f   : > { %v1856_v63 = vpop.permute.xlu0 %1855  ;;  %v1489_v0 = vpack.c.bf16 %v739_v62, %v737_v61  ;;  %v884_v1 = vsel %vm879_vm7, %v1852_v60, %v1837_v47  ;;  %v886_v2 = vsel %vm879_vm7, %v1853_v59, %v1842_v51 }
 0x250   : > { %v1858_v3 = vunpack.i.h.bf16 %v1856_v63  ;;  %v1857_v4 = vunpack.i.l.bf16 %v1856_v63  ;;  %v1861_v5 = vpop.permute.xlu1 %1860  ;;  %v1513_v6 = vpack.c.bf16 %v886_v2, %v884_v1 }
 0x251   : > { %v1863_v7 = vunpack.i.h.bf16 %v1861_v5  ;;  %v1862_v8 = vunpack.i.l.bf16 %v1861_v5  ;;  %1490 = vmatpush1.bf16.msra.mxu1 %v1489_v0 }
 0x252   : > { %1514 = vmatpush1.bf16.msra.mxu0 %v1513_v6  ;;  %v783_v11 = vsel %vm781_vm8, %v1857_v4, %v1858_v3 }
 0x253   : > { %v1866_v12 = vpop.permute.xlu0 %1865  ;;  %v785_v10 = vsel %vm781_vm8, %v1862_v8, %v1863_v7 }
 0x254   : > { %v1868_v15 = vunpack.i.h.bf16 %v1866_v12  ;;  %v1867_v16 = vunpack.i.l.bf16 %v1866_v12  ;;  %v1871_v17 = vpop.permute.xlu1 %1870  ;;  %v1491_v18 = vpack.c.bf16 %v785_v10, %v783_v11 }
 0x255   : > { %v1873_v9 = vunpack.i.h.bf16 %v1871_v17  ;;  %v1872_v13 = vunpack.i.l.bf16 %v1871_v17 }
 0x256   : > { %1492 = vmatprep.subr.bf16.mxu1 %v1491_v18  ;;  %v930_v19 = vsel %vm928_vm9, %v1867_v16, %v1868_v15 }
 0x257   : > { %v1876_v20 = vpop.permute.xlu0 %1875  ;;  %v932_v21 = vsel %vm928_vm9, %v1872_v13, %v1873_v9 }
 0x258   : > { %v1878_v22 = vunpack.i.h.bf16 %v1876_v20  ;;  %v1877_v23 = vunpack.i.l.bf16 %v1876_v20  ;;  %v1881_v24 = vpop.permute.xlu1 %1880  ;;  %v1515_v25 = vpack.c.bf16 %v932_v21, %v930_v19 }
 0x259   : > { %v1883_v26 = vunpack.i.h.bf16 %v1881_v24  ;;  %v1882_v27 = vunpack.i.l.bf16 %v1881_v24 }
 0x25a   : > { %1516 = vmatprep.subr.bf16.mxu0 %v1515_v25  ;;  %v782_v28 = vsel %vm781_vm8, %v1877_v23, %v1857_v4  ;;  %v784_v29 = vsel %vm781_vm8, %v1878_v22, %v1862_v8 }
 0x25b   : > { %v1886_v30 = vpop.permute.xlu0 %1885  ;;  %v1493_v31 = vpack.c.bf16 %v784_v29, %v782_v28  ;;  %v929_v32 = vsel %vm928_vm9, %v1882_v27, %v1867_v16  ;;  %v931_v33 = vsel %vm928_vm9, %v1883_v26, %v1872_v13 }
 0x25c   : > { %v1888_v34 = vunpack.i.h.bf16 %v1886_v30  ;;  %v1887_v35 = vunpack.i.l.bf16 %v1886_v30  ;;  %v1891_v36 = vpop.permute.xlu1 %1890  ;;  %v1517_v37 = vpack.c.bf16 %v931_v33, %v929_v32 }
 0x25d   : > { %v1893_v38 = vunpack.i.h.bf16 %v1891_v36  ;;  %v1892_v39 = vunpack.i.l.bf16 %v1891_v36  ;;  %1494 = vmatpush1.bf16.msra.mxu1 %v1493_v31 }
 0x25e   : > { %1518 = vmatpush1.bf16.msra.mxu0 %v1517_v37  ;;  %v787_v40 = vsel %vm781_vm8, %v1887_v35, %v1888_v34 }
 0x25f   : > { %v1896_v41 = vpop.permute.xlu0 %1895  ;;  %v789_v42 = vsel %vm781_vm8, %v1892_v39, %v1893_v38 }
 0x260   : > { %v1898_v43 = vunpack.i.h.bf16 %v1896_v41  ;;  %v1897_v44 = vunpack.i.l.bf16 %v1896_v41  ;;  %v1901_v45 = vpop.permute.xlu1 %1900  ;;  %v1495_v46 = vpack.c.bf16 %v789_v42, %v787_v40 }
 0x261   : > { %v1903_v47 = vunpack.i.h.bf16 %v1901_v45  ;;  %v1902_v48 = vunpack.i.l.bf16 %v1901_v45 }
 0x262   : > { %1496 = vmatprep.subr.bf16.mxu1 %v1495_v46  ;;  %v934_v49 = vsel %vm928_vm9, %v1897_v44, %v1898_v43 }
 0x263   : > { %v1906_v50 = vpop.permute.xlu0 %1905  ;;  %v936_v51 = vsel %vm928_vm9, %v1902_v48, %v1903_v47 }
 0x264   : > { %v1908_v52 = vunpack.i.h.bf16 %v1906_v50  ;;  %v1907_v53 = vunpack.i.l.bf16 %v1906_v50  ;;  %v1911_v54 = vpop.permute.xlu1 %1910  ;;  %v1519_v55 = vpack.c.bf16 %v936_v51, %v934_v49 }
 0x265   : > { %v1913_v56 = vunpack.i.h.bf16 %v1911_v54  ;;  %v1912_v57 = vunpack.i.l.bf16 %v1911_v54 }
 0x266   : > { %1520 = vmatprep.subr.bf16.mxu0 %v1519_v55  ;;  %v786_v58 = vsel %vm781_vm8, %v1907_v53, %v1887_v35  ;;  %v788_v59 = vsel %vm781_vm8, %v1908_v52, %v1892_v39 }
 0x267   : > { %v1916_v60 = vpop.permute.xlu0 %1915  ;;  %v1497_v61 = vpack.c.bf16 %v788_v59, %v786_v58  ;;  %v933_v62 = vsel %vm928_vm9, %v1912_v57, %v1897_v44  ;;  %v935_v63 = vsel %vm928_vm9, %v1913_v56, %v1902_v48 }
 0x268   : > { %v1918_v0 = vunpack.i.h.bf16 %v1916_v60  ;;  %v1917_v1 = vunpack.i.l.bf16 %v1916_v60  ;;  %v1921_v2 = vpop.permute.xlu1 %1920  ;;  %v1521_v3 = vpack.c.bf16 %v935_v63, %v933_v62  ;;  %v1004_v62 = vld [vmem:[#allocation4 + $0x10] sm:$0xff]  ;;  %v1006_v63 = vld [vmem:[#allocation4 + $0x20] sm:$0xff] }
 0x269   : > { %v1923_v4 = vunpack.i.h.bf16 %v1921_v2  ;;  %v1922_v5 = vunpack.i.l.bf16 %v1921_v2  ;;  %1498 = vmatpush1.bf16.msra.mxu1 %v1497_v61  ;;  %v1002_v61 = vld [vmem:[#allocation4] sm:$0xff]  ;;  %v1009_v2 = vld [vmem:[#allocation4 + $0x38] sm:$0xff] }
 0x26a   : > { %1522 = vmatpush1.bf16.msra.mxu0 %v1521_v3  ;;  %v832_v6 = vsel %vm830_vm10, %v1917_v1, %v1918_v0  ;;  %v1005_v0 = vld [vmem:[#allocation4 + $0x18] sm:$0xff]  ;;  %v1008_v3 = vld [vmem:[#allocation4 + $0x30] sm:$0xff] }
 0x26b   : > { %v1926_v7 = vpop.permute.xlu0 %1925  ;;  %v834_v8 = vsel %vm830_vm10, %v1922_v5, %v1923_v4  ;;  %v1010_v4 = vld [vmem:[#allocation4 + $0x40] sm:$0xff] }
 0x26c   : > { %v1928_v11 = vunpack.i.h.bf16 %v1926_v7  ;;  %v1927_v12 = vunpack.i.l.bf16 %v1926_v7  ;;  %v1931_v10 = vpop.permute.xlu1 %1930  ;;  %v1499_v15 = vpack.c.bf16 %v834_v8, %v832_v6  ;;  %v1011_v6 = vld [vmem:[#allocation4 + $0x48] sm:$0xff]  ;;  %v1013_v7 = vld [vmem:[#allocation4 + $0x58] sm:$0xff] }
 0x26d   : > { %v1933_v16 = vunpack.i.h.bf16 %v1931_v10  ;;  %v1932_v17 = vunpack.i.l.bf16 %v1931_v10 }
 0x26e   : > { %1500 = vmatprep.subr.bf16.mxu1 %v1499_v15  ;;  %v979_v18 = vsel %vm977_vm11, %v1927_v12, %v1928_v11 }
 0x26f   : > { %v1936_v9 = vpop.permute.xlu0 %1935  ;;  %v981_v13 = vsel %vm977_vm11, %v1932_v17, %v1933_v16 }
 0x270   : > { %v1938_v19 = vunpack.i.h.bf16 %v1936_v9  ;;  %v1937_v20 = vunpack.i.l.bf16 %v1936_v9  ;;  %v1941_v21 = vpop.permute.xlu1 %1940  ;;  %v1523_v22 = vpack.c.bf16 %v981_v13, %v979_v18 }
 0x271   : > { %v1943_v23 = vunpack.i.h.bf16 %v1941_v21  ;;  %v1942_v24 = vunpack.i.l.bf16 %v1941_v21 }
 0x272   : > { %1524 = vmatprep.subr.bf16.mxu0 %v1523_v22  ;;  %v831_v25 = vsel %vm830_vm10, %v1937_v20, %v1917_v1  ;;  %v833_v26 = vsel %vm830_vm10, %v1938_v19, %v1922_v5  ;;  %v1007_v1 = vld [vmem:[#allocation4 + $0x28] sm:$0xff]  ;;  %v1012_v5 = vld [vmem:[#allocation4 + $0x50] sm:$0xff] }
 0x273   : > { %v1946_v27 = vpop.permute.xlu0 %1945  ;;  %v1501_v28 = vpack.c.bf16 %v833_v26, %v831_v25  ;;  %v978_v29 = vsel %vm977_vm11, %v1942_v24, %v1927_v12  ;;  %v980_v30 = vsel %vm977_vm11, %v1943_v23, %v1932_v17 }
 0x274   : > { %v1948_v31 = vunpack.i.h.bf16 %v1946_v27  ;;  %v1947_v32 = vunpack.i.l.bf16 %v1946_v27  ;;  %v1951_v33 = vpop.permute.xlu1 %1950  ;;  %v1525_v34 = vpack.c.bf16 %v980_v30, %v978_v29 }
 0x275   : > { %v1953_v35 = vunpack.i.h.bf16 %v1951_v33  ;;  %v1952_v36 = vunpack.i.l.bf16 %v1951_v33  ;;  %1502 = vmatpush1.bf16.msra.mxu1 %v1501_v28 }
 0x276   : > { %1526 = vmatpush1.bf16.msra.mxu0 %v1525_v34  ;;  %v836_v37 = vsel %vm830_vm10, %v1947_v32, %v1948_v31 }
 0x277   : > { %v1956_v38 = vpop.permute.xlu0 %1955  ;;  %v838_v39 = vsel %vm830_vm10, %v1952_v36, %v1953_v35 }
 0x278   : > { %v1958_v40 = vunpack.i.h.bf16 %v1956_v38  ;;  %v1957_v41 = vunpack.i.l.bf16 %v1956_v38  ;;  %v1961_v42 = vpop.permute.xlu1 %1960  ;;  %v1503_v43 = vpack.c.bf16 %v838_v39, %v836_v37 }
 0x279   : > { %v1963_v44 = vunpack.i.h.bf16 %v1961_v42  ;;  %v1962_v45 = vunpack.i.l.bf16 %v1961_v42 }
 0x27a   : > { %1504 = vmatprep.subr.bf16.mxu1 %v1503_v43  ;;  %v983_v46 = vsel %vm977_vm11, %v1957_v41, %v1958_v40 }
 0x27b   : > { %v1966_v47 = vpop.permute.xlu0 %1965  ;;  %v985_v48 = vsel %vm977_vm11, %v1962_v45, %v1963_v44 }
 0x27c   : > { %v1968_v49 = vunpack.i.h.bf16 %v1966_v47  ;;  %v1967_v50 = vunpack.i.l.bf16 %v1966_v47  ;;  %v1971_v51 = vpop.permute.xlu1 %1970  ;;  %v1527_v52 = vpack.c.bf16 %v985_v48, %v983_v46 }
 0x27d   : > { %v1973_v53 = vunpack.i.h.bf16 %v1971_v51  ;;  %v1972_v54 = vunpack.i.l.bf16 %v1971_v51 }
 0x27e   : > { %1528 = vmatprep.subr.bf16.mxu0 %v1527_v52  ;;  %v835_v55 = vsel %vm830_vm10, %v1967_v50, %v1947_v32  ;;  %v837_v56 = vsel %vm830_vm10, %v1968_v49, %v1952_v36 }
 0x27f   : > { %v1505_v57 = vpack.c.bf16 %v837_v56, %v835_v55  ;;  %v982_v58 = vsel %vm977_vm11, %v1972_v54, %v1957_v41  ;;  %v984_v59 = vsel %vm977_vm11, %v1973_v53, %v1962_v45 }
 0x280   : > { %v1529_v60 = vpack.c.bf16 %v984_v59, %v982_v58 }
 0x281   : > { %1506 = vmatpush1.bf16.msra.mxu1 %v1505_v57 }
 0x282   : > { %1530 = vmatpush1.bf16.msra.mxu0 %v1529_v60 }
 0x284   : > { %1179 = vmatmul.mubr.f32.vlgmr.msra.gmra.mrb[0].mxu1 %v1002_v61 }
 0x285   : > { %1431 = vmatmul.mubr.msk.f32.vlgmr.msra.gmra.mrb[0].mxu0 %vm879_vm7, %v1004_v62  ;;  %1184 = vmatprep.mubr.f32.mxu1 %v1006_v63 }
 0x286   : > { %1273 = vmatprep.mubr.f32.mxu0 %v2178_v14 }
 0x288   : > { %1185 = vmatmul.mubr.f32.gmra.mrb[2].mxu1 %v1005_v0 }
 0x289   : > { %1432 = vmatmul.mubr.msk.f32.gmra.mrb[2].mxu0 %vm879_vm7, %v1007_v1  ;;  %1190 = vmatprep.mubr.f32.mxu1 %v1009_v2 }
 0x28a   : > { %1279 = vmatprep.mubr.f32.mxu0 %v2178_v14 }
 0x28c   : > { %1191 = vmatmul.mubr.f32.gmra.mrb[4].mxu1 %v1008_v3 }
 0x28d   : > { %1433 = vmatmul.mubr.msk.f32.gmra.mrb[4].mxu0 %vm879_vm7, %v1010_v4  ;;  %1196 = vmatprep.mubr.f32.mxu1 %v1012_v5 }
 0x28e   : > { %1285 = vmatprep.mubr.f32.mxu0 %v2178_v14 }
 0x290   : > { %1197 = vmatmul.mubr.f32.gmra.mrb[6].mxu1 %v1011_v6 }
 0x291   : > { %1434 = vmatmul.mubr.msk.f32.gmra.mrb[6].mxu0 %vm879_vm7, %v1013_v7 }
 0x357   : > { %v1180_v8 = vpop.f32.mrb[0].mxu1 }
 0x358   : > { %v1269_v11 = vpop.f32.mrb[0].mxu0  ;;  %v1182_v12 = vpop.f32.mrb[1].mxu1 }
 0x359   : > { %v1270_v10 = vadd.f32 %v1269_v11, %v1180_v8  ;;  %v1271_v15 = vpop.f32.mrb[1].mxu0 }
 0x35a   : > { %v1272_v16 = vadd.f32 %v1271_v15, %v1182_v12 }
 0x35b   : > { %1292 = vst [vmem:[%s2406_s26] sm:$0xff] %v1270_v10  ;;  %v1186_v17 = vpop.f32.mrb[2].mxu1 }
 0x35c   : > { %1293 = vst [vmem:[%s2406_s26 + $0x8] sm:$0xff] %v1272_v16  ;;  %v1275_v18 = vpop.f32.mrb[2].mxu0  ;;  %v1188_v14 = vpop.f32.mrb[3].mxu1 }
 0x35d   : > { %v1276_v9 = vadd.f32 %v1275_v18, %v1186_v17  ;;  %v1277_v13 = vpop.f32.mrb[3].mxu0 }
 0x35e   : > { %v1278_v19 = vadd.f32 %v1277_v13, %v1188_v14 }
 0x35f   : > { %1294 = vst [vmem:[%s2406_s26 + $0x10] sm:$0xff] %v1276_v9  ;;  %v1192_v20 = vpop.f32.mrb[4].mxu1 }
 0x360   : > { %1295 = vst [vmem:[%s2406_s26 + $0x18] sm:$0xff] %v1278_v19  ;;  %v1281_v21 = vpop.f32.mrb[4].mxu0  ;;  %v1194_v22 = vpop.f32.mrb[5].mxu1 }
 0x361   : > { %v1282_v23 = vadd.f32 %v1281_v21, %v1192_v20  ;;  %v1283_v24 = vpop.f32.mrb[5].mxu0 }
 0x362   : > { %v1284_v25 = vadd.f32 %v1283_v24, %v1194_v22 }
 0x363   : > { %1296 = vst [vmem:[%s2406_s26 + $0x20] sm:$0xff] %v1282_v23  ;;  %v1198_v26 = vpop.f32.mrb[6].mxu1 }
 0x364   : > { %1297 = vst [vmem:[%s2406_s26 + $0x28] sm:$0xff] %v1284_v25  ;;  %v1287_v27 = vpop.f32.mrb[6].mxu0  ;;  %v1200_v28 = vpop.f32.mrb[7].mxu1 }
 0x365   : > { %v1288_v29 = vadd.f32 %v1287_v27, %v1198_v26  ;;  %v1289_v30 = vpop.f32.mrb[7].mxu0 }
 0x366   : > { %v1290_v31 = vadd.f32 %v1289_v30, %v1200_v28 }
 0x367   : > { %1298 = vst [vmem:[%s2406_s26 + $0x30] sm:$0xff] %v1288_v29 }
 0x368   : > { %1299 = vst [vmem:[%s2406_s26 + $0x38] sm:$0xff] %v1290_v31 }
 0x369   : > { %2045 = shalt.err (!%p2042_p8)
}
 0x36a   : > { %s2046_s15 = scalar_lea.hbm %s2696_s12, 1024  ;;  %s2050_s9 = scalar_lea.hbm %s2801_s30, 4096 }
 0x36b   : > { %p2047_p12 = scmp.ne.s32.totalorder %s2696_s12, %s2046_s15  ;;  %p2051_p10 = scmp.lt.u32.totalorder %s2696_s12, %s2801_s30 }
 0x36c   : > { %p2052_p3 = scmp.lt.u32.totalorder %s2050_s9, %s2046_s15  ;;  %p2054_p7 = scmp.lt.u32.totalorder %s2046_s15, %s2696_s12 }
 0x36d   : > { %p2048_p1 = pnand %p2047_p12, %p2802_p9 }
 0x36e   : > { %p2053_p4 = por %p2052_p3, %p2051_p10 }
 0x36f   : > { %p2049_p6 = pneg %p2048_p1 }
 0x370   : > { %p2055_p11 = por %p2054_p7, %p2053_p4 }
 0x372   : > { %p2056_p13 = pnand %p2055_p11, %p2049_p6 }
 0x374   : > { %2059 = shalt.err (!%p2056_p13)
}
 0x375   : > { %s2180_s27 = smov 256   ;;  %s2181_s2 = smov 512  }
 0x376   : > { %s2182_s21 = smov 16  }
 0x377   : > { %1545 = dma.vmem_to_hbm [thread:$0]  (%p2802_p9), %s2698_s22, 1024, %s2696_s12, %s2704_s13, %s2180_s27, %s2181_s2, %s2182_s21  }
 0x378 PF: > { %s2803_s11 = sld [smem:[#allocation13_spill]]  ;;  %s2804_s8 = sld [smem:[#allocation15_spill]] }
 0x379   : > { %p1562_p0 = scmp.ge.s32.totalorder %s2158_s25, 2 }
 0x37e   : > { %s1331_s14 = sand.u32 1, %s2803_s11   ;;  %p2805_p2 = scmp.ne.s32.totalorder %s2804_s8, 0 }
 0x37f   : > { %s1332_s23 = scalar_lea.sflag [#allocation6], %s1331_s14 }
 0x380   : > { %p1556_p5 = pnand %p1562_p0, %p2805_p2 }
 0x382   : > { %2113 = dma.done.wait (!%p1556_p5), %s1332_s23, 1024  }
 0x383   : > { %2115 = vsyncadd (!%p1556_p5), %s1332_s23, 4294966272  ;;  %s21_s25 = sadd.s32 1, %s2158_s25   ;;  %s2806_s21 = sld [smem:[#allocation14_spill]] }
 0x384   : > { %p18_p8 = scmp.ge.s32.totalorder %s21_s25, 6   ;;  %s2807_s23 = sld [smem:[#allocation16_spill]] }
 0x385   : > { %s2808_s5 = sld [smem:[#allocation17_spill]]  ;;  %s2809_s15 = smov %s2122_s16 }
 0x386   : > { %s2810_s16 = smov %s2126_s17  ;;  %s2811_s17 = smov %s2345_s18 }
 0x387   : > { %s2812_s18 = smov %s2134_s19  ;;  %s2813_s19 = smov %s2138_s20 }
 0x388   : > { %s2814_s20 = smov %s2340_s29  ;;  %s2815_s22 = smov %s2154_s24 }
 0x389   :  { %20 = sbr.rel (!%p18_p8) target bundleno = 13 (0xd), region = 92 }
 0x38b   : > { %s2816_s24 = smov %s2808_s5 }
 0x390   :  { %1337 = vsyncpa [#allocation5], 1 }
 0x391   :  { %1339 = vsyncpa [#allocation5 + $0x1], 1 }
 0x392   :  { %1340 = vsyncpa [#allocation8], 1 }
 0x393   :  { %1342 = vsyncpa [#allocation8 + $0x1], 1 }
 0x394   :  { %1343 = vsyncpa [#allocation6], 1 }
 0x395   :  { %1345 = vsyncpa [#allocation6 + $0x1], 1 }

</bundles_post_ra>
